<compile_context>
chip_gen: v5e
topology: v5e:2x2
jax: 0.10.0
libtpu: 0.0.40
codegen_flags: <defaults>
</compile_context>

<pallas_src>
import functools

import numpy as np

import jax
import jax.numpy as jnp
from jax.experimental import pallas as pl
from jax.experimental.pallas import tpu as pltpu


# ----------------------------------------------------------------------------
# Kernel
# ----------------------------------------------------------------------------
def glow_step_kernel(
    x_ref,         # (1, C, HW)  one sample, channels-major, spatial flattened
    masks_ref,     # (4, HW)     tap validity: [row-up, row-down, col-left, col-right]
    w1x1_ref,      # (C, C)      1x1 conv weight with Actnorm scale folded in
    b1x1_ref,      # (C, 1)      Actnorm bias folded through the 1x1 conv
    w0_ref,        # (9, A, Ch)  conv0 3x3 weights, tap-major
    b0_ref,        # (A, 1)
    w1_ref,        # (A, A)      conv1 1x1 weights
    b1_ref,        # (A, 1)
    wz_ref,        # (9, C, A)   ZeroConv2d 3x3 weights, tap-major, * exp(3*ls)
    bias_map_ref,  # (C, HW)     (zconv bias + value=1 pad ring)*exp(3*ls) (+2 on first Ch rows)
    out_ref,       # (1, C, HW)
    dlog3_ref,     # (1, 1, 1)   coupling log-det (data-independent part added in wrapper)
    *,
    width,         # spatial width W (static)
):
    _, C, HW = x_ref.shape
    Ch = C // 2
    W = width
    f32 = jnp.float32

    x = x_ref[0].astype(f32)                                      # (C, HW)

    # ---- Actnorm (folded host-side) + invertible 1x1 conv: z = W' @ x + b'.
    z = jnp.dot(w1x1_ref[...], x, preferred_element_type=f32) + b1x1_ref[...]
    z1 = z[0:Ch, :]                                               # (Ch, HW)
    z2 = z[Ch:C, :]                                               # (Ch, HW)

    # ---- Per-tap validity masks (resident params; combined once per step).
    row_m = {-1: masks_ref[0:1, :], 1: masks_ref[1:2, :]}
    col_m = {-1: masks_ref[2:3, :], 1: masks_ref[3:4, :]}
    taps = [(dy, dx) for dy in (-1, 0, 1) for dx in (-1, 0, 1)]
    tap_mask = {}
    for dy, dx in taps:
        m = row_m.get(dy)
        if dx != 0:
            m = col_m[dx] if m is None else m * col_m[dx]
        tap_mask[(dy, dx)] = m

    def tap_shift(a, dy, dx):
        # out[:, i*W+j] = a[:, (i+dy)*W + (j+dx)], zero outside the HxW image.
        s = dy * W + dx
        out = a if s == 0 else pltpu.roll(a, shift=(-s) % HW, axis=1)
        m = tap_mask[(dy, dx)]
        return out if m is None else out * m

    # ---- conv0: 3x3 Ch->A (zero pad) + ReLU, tap-accumulated on the MXU.
    # The 9-tap im2col slab is never materialised; only the tiny (Ch, HW)
    # input slab is rolled.
    h = None
    for t, (dy, dx) in enumerate(taps):
        c = jnp.dot(w0_ref[t], tap_shift(z1, dy, dx), preferred_element_type=f32)
        h = c if h is None else h + c
    h = jnp.maximum(h + b0_ref[...], 0.0)                         # (A, HW)

    # ---- conv1: 1x1 A->A + ReLU.
    h = jnp.maximum(jnp.dot(w1_ref[...], h, preferred_element_type=f32)
                    + b1_ref[...], 0.0)                           # (A, HW)

    # ---- ZeroConv2d 3x3 A->C.  exp(3*log_scale), the value=1 padding ring and
    # the coupling's +2.0 are folded into wz/bias_map host-side.  The shift is
    # applied to the small (C, HW) per-tap result (shift commutes with the
    # per-column matmul), so the big (A, HW) slab is never rolled.
    net = bias_map_ref[...]                                       # (C, HW)
    for t, (dy, dx) in enumerate(taps):
        mm = jnp.dot(wz_ref[t], h, preferred_element_type=f32)    # (C, HW)
        net = net + tap_shift(mm, dy, dx)

    # ---- Affine coupling.  Stable fused log-sigmoid gives log(scale) & scale.
    t_ls = net[0:Ch, :]                                           # already + 2.0
    shift = net[Ch:C, :]
    log_scale = jnp.minimum(t_ls, 0.0) - jnp.log(1.0 + jnp.exp(-jnp.abs(t_ls)))
    scale = jnp.exp(log_scale)
    z2n = (z2 + shift) * scale

    out_ref[0, :, :] = jnp.concatenate([z1, z2n], axis=0).astype(out_ref.dtype)
    dlog3_ref[...] = jnp.sum(log_scale).reshape(1, 1, 1).astype(dlog3_ref.dtype)


# ----------------------------------------------------------------------------
# Wrapper
# ----------------------------------------------------------------------------
def glow_step_forward(x_nchw, kp):
    B, C, H, W = x_nchw.shape
    HW = H * W
    # NCHW -> (B, C, H*W) is a metadata-only reshape (row-major contiguous).
    x = x_nchw.reshape(B, C, HW).astype(jnp.float32)

    names = ("masks", "w1x1f", "b1x1", "w0", "b0", "w1", "b1", "wz", "bias_map")
    vals = [kp[n] for n in names]

    def resident(a):  # whole parameter resident across the grid
        return pl.BlockSpec(a.shape, lambda b, _nd=a.ndim: (0,) * _nd)

    out_flat, dlog3 = pl.pallas_call(
        functools.partial(glow_step_kernel, width=W),
        grid=(B,),
        out_shape=(jax.ShapeDtypeStruct((B, C, HW), jnp.float32),
                   jax.ShapeDtypeStruct((B, 1, 1), jnp.float32)),
        in_specs=[pl.BlockSpec((1, C, HW), lambda b: (b, 0, 0))]
                 + [resident(v) for v in vals],
        out_specs=(pl.BlockSpec((1, C, HW), lambda b: (b, 0, 0)),
                   pl.BlockSpec((1, 1, 1), lambda b: (b, 0, 0))),
        compiler_params=pltpu.CompilerParams(
            dimension_semantics=("parallel",),
            vmem_limit_bytes=32 * 1024 * 1024),
    )(x, *vals)

    out = out_flat.reshape(B, C, H, W)
    # Data-independent part of the log-determinant (precomputed host-side).
    log_det = dlog3.reshape(B) + kp["dlog12"]
    return out, log_det


# ----------------------------------------------------------------------------
# Parameter setup (host-side JAX glue, mirrors the PyTorch module __init__)
# ----------------------------------------------------------------------------
def init_params(key, C, A, x_nchw):
    Ch = C // 2
    k1, k2, k3 = jax.random.split(key, 3)

    # Actnorm data-dependent init (module's first training forward).
    flat = jnp.transpose(x_nchw, (1, 0, 2, 3)).reshape(C, -1)
    mean = jnp.mean(flat, axis=1)
    std = jnp.std(flat, axis=1, ddof=1)               # torch .std() is unbiased
    an_bias = -mean
    an_logscale = jnp.log(1.0 / (std + 1e-6))

    # Invertible 1x1 conv: random orthogonal -> PLU parameterisation.
    w0 = jax.random.normal(k1, (C, C), dtype=jnp.float32)
    q, _ = jnp.linalg.qr(w0)
    p_mat, l, u = jax.scipy.linalg.lu(q)
    s_diag = jnp.diag(u)
    w_u = jnp.triu(u, 1)
    u_mask = jnp.triu(jnp.ones((C, C), jnp.float32), 1)
    l_mask = u_mask.T
    s_sign = jnp.sign(s_diag)
    w_s = jnp.log(jnp.abs(s_diag))
    w1x1 = p_mat @ (l * l_mask + jnp.eye(C, dtype=jnp.float32)) @ \
        (w_u * u_mask + jnp.diag(s_sign * jnp.exp(w_s)))          # z = W @ x

    conv0_w = 0.05 * jax.random.normal(k2, (A, Ch, 3, 3), jnp.float32)
    conv1_w = 0.05 * jax.random.normal(k3, (A, A, 1, 1), jnp.float32)

    return dict(
        an_bias=an_bias.astype(jnp.float32),
        an_logscale=an_logscale.astype(jnp.float32),
        w1x1=w1x1.astype(jnp.float32),
        w_s=w_s.astype(jnp.float32),
        conv0_w=conv0_w, conv0_b=jnp.zeros((A,), jnp.float32),
        conv1_w=conv1_w, conv1_b=jnp.zeros((A,), jnp.float32),
        zconv_w=jnp.zeros((C, A, 3, 3), jnp.float32),             # ZeroConv2d
        zconv_b=jnp.zeros((C,), jnp.float32),
        z_logscale=jnp.zeros((C,), jnp.float32),
    )


def fold_params(p, H, W):
    """Fold parameter-only constants into kernel inputs.

    NOTE: these folds are functions of the parameters — recompute after every
    parameter update during training or the results go silently stale.
    """
    C = p["w1x1"].shape[0]
    Ch = C // 2
    A = p["conv0_w"].shape[0]
    HW = H * W
    f32 = jnp.float32

    # (1) Actnorm folded into the invertible 1x1 conv: z = W' @ x + b'.
    e = jnp.exp(p["an_logscale"])                                  # (C,)
    w1x1f = (p["w1x1"] * e[None, :]).astype(f32)                   # column-scaled
    b1x1 = (p["w1x1"] @ (p["an_bias"] * e)).reshape(C, 1).astype(f32)

    # (2) Conv weights repacked tap-major for in-kernel tap accumulation.
    w0 = jnp.transpose(p["conv0_w"], (2, 3, 0, 1)).reshape(9, A, Ch).astype(f32)
    b0 = p["conv0_b"].reshape(A, 1).astype(f32)
    w1 = p["conv1_w"][:, :, 0, 0].astype(f32)
    b1 = p["conv1_b"].reshape(A, 1).astype(f32)

    # (3) ZeroConv2d: fold exp(3*log_scale) into weights/bias, fold the value=1
    #     padding ring into a per-pixel bias map, and fold the coupling's +2.0
    #     into the log-scale half of that map.
    zs = jnp.exp(3.0 * p["z_logscale"])                            # (C,)
    wz_sc = p["zconv_w"] * zs[:, None, None, None]                 # (C, A, 3, 3)
    wz = jnp.transpose(wz_sc, (2, 3, 0, 1)).reshape(9, C, A).astype(f32)

    tap_sum = wz_sc.sum(axis=1)                                    # (C, 3, 3)
    ii = jnp.arange(H)[:, None]
    jj = jnp.arange(W)[None, :]
    pad_bias = jnp.zeros((C, H, W), f32)
    for ky in range(3):
        for kx in range(3):
            dy, dx = ky - 1, kx - 1
            oob = ((ii + dy < 0) | (ii + dy >= H) |
                   (jj + dx < 0) | (jj + dx >= W)).astype(f32)
            pad_bias = pad_bias + tap_sum[:, ky, kx][:, None, None] * oob[None]
    bias_map = pad_bias.reshape(C, HW) + (p["zconv_b"] * zs)[:, None]
    bias_map = bias_map.at[0:Ch, :].add(2.0).astype(f32)

    # (4) Tap validity masks shared by both 3x3 convs:
    #     [reads row above valid, reads row below valid,
    #      reads col left valid,  reads col right valid].
    ivec = jnp.repeat(jnp.arange(H), W)
    jvec = jnp.tile(jnp.arange(W), H)
    masks = jnp.stack([ivec > 0, ivec < H - 1,
                       jvec > 0, jvec < W - 1]).astype(f32)        # (4, HW)

    # (5) Data-independent part of the log-determinant.
    dlog12 = ((jnp.sum(p["an_logscale"]) + jnp.sum(p["w_s"])) * float(HW)).astype(f32)

    return dict(masks=masks, w1x1f=w1x1f, b1x1=b1x1, w0=w0, b0=b0, w1=w1,
                b1=b1, wz=wz, bias_map=bias_map, dlog12=dlog12)


# ----------------------------------------------------------------------------
# Pure-JAX reference (mirrors the PyTorch module forward exactly)
# ----------------------------------------------------------------------------
def reference_forward(x, p):
    hi = jax.lax.Precision.HIGHEST
    B, C, H, W = x.shape
    Ch = C // 2

    def conv3x3(a, w, b, pad_value):
        ap = jnp.pad(a, ((0, 0), (0, 0), (1, 1), (1, 1)),
                     constant_values=pad_value)
        o = jnp.zeros((a.shape[0], w.shape[0], H, W), jnp.float32)
        for ky in range(3):
            for kx in range(3):
                o = o + jnp.einsum("ok,bkhw->bohw", w[:, :, ky, kx],
                                   ap[:, :, ky:ky + H, kx:kx + W], precision=hi)
        return o + b.reshape(1, -1, 1, 1)

    xa = (x + p["an_bias"].reshape(1, C, 1, 1)) * jnp.exp(
        p["an_logscale"].reshape(1, C, 1, 1))
    d1 = jnp.sum(p["an_logscale"]) * (H * W)
    z = jnp.einsum("oc,bchw->bohw", p["w1x1"], xa, precision=hi)
    d2 = jnp.sum(p["w_s"]) * (H * W)

    z1, z2 = z[:, :Ch], z[:, Ch:]
    h = jax.nn.relu(conv3x3(z1, p["conv0_w"], p["conv0_b"], 0.0))
    h = jax.nn.relu(jnp.einsum("oc,bchw->bohw", p["conv1_w"][:, :, 0, 0], h,
                               precision=hi) + p["conv1_b"].reshape(1, -1, 1, 1))
    net = conv3x3(h, p["zconv_w"], p["zconv_b"], 1.0)              # value=1 pad
    net = net * jnp.exp(3.0 * p["z_logscale"].reshape(1, C, 1, 1))
    log_s, shift = net[:, :Ch], net[:, Ch:]
    scale = jax.nn.sigmoid(log_s + 2.0)
    z2n = (z2 + shift) * scale
    out = jnp.concatenate([z1, z2n], axis=1)
    d3 = jnp.sum(jnp.log(scale), axis=(1, 2, 3))
    return out, d1 + d2 + d3


# ----------------------------------------------------------------------------
if __name__ == "__main__":
    key = jax.random.PRNGKey(0)
    B, C, H, W = 2, 4, 16, 16          # in_chs=4
    A = 32                             # affine_conv_chs (small for the demo)

    kx, kp, kz1, kz2, kz3 = jax.random.split(key, 5)
    x = jax.random.normal(kx, (B, C, H, W), dtype=jnp.float32)     # NCHW input
    params = init_params(kp, C, A, x)

    # ZeroConv2d is zero-initialised in the module; perturb it here so the demo
    # actually exercises the 3x3 tap-accumulation / padding-fold path.
    params["zconv_w"] = 0.02 * jax.random.normal(kz1, (C, A, 3, 3), jnp.float32)
    params["zconv_b"] = 0.02 * jax.random.normal(kz2, (C,), jnp.float32)
    params["z_logscale"] = 0.02 * jax.random.normal(kz3, (C,), jnp.float32)

    kparams = fold_params(params, H, W)        # refold after any param update
    out, log_det = glow_step_forward(x, kparams)
    jax.block_until_ready((out, log_det))
    assert out.shape == (B, C, H, W) and log_det.shape == (B,)

    ref_out, ref_ld = reference_forward(x, params)
    np.testing.assert_allclose(np.asarray(out), np.asarray(ref_out),
                               rtol=3e-2, atol=3e-2)
    np.testing.assert_allclose(np.asarray(log_det), np.asarray(ref_ld),
                               rtol=3e-2, atol=5e-1)
    print("KERNEL_OK")
</pallas_src>

<mosaic_0001>
module attributes {stable_mosaic.version = 11 : i64} {
  func.func @glow_step_kernel(%arg0: i32, %arg1: memref<1x4x256xf32, #tpu.memory_space<vmem>>, %arg2: memref<4x256xf32, #tpu.memory_space<vmem>>, %arg3: memref<4x4xf32, #tpu.memory_space<vmem>>, %arg4: memref<4x1xf32, #tpu.memory_space<vmem>>, %arg5: memref<9x32x2xf32, #tpu.memory_space<vmem>>, %arg6: memref<32x1xf32, #tpu.memory_space<vmem>>, %arg7: memref<32x32xf32, #tpu.memory_space<vmem>>, %arg8: memref<32x1xf32, #tpu.memory_space<vmem>>, %arg9: memref<9x4x32xf32, #tpu.memory_space<vmem>>, %arg10: memref<4x256xf32, #tpu.memory_space<vmem>>, %arg11: memref<1x4x256xf32, #tpu.memory_space<vmem>>, %arg12: memref<1x1x1xf32, #tpu.memory_space<vmem>>) attributes {dimension_semantics = [#tpu.dimension_semantics<parallel>], iteration_bounds = array<i64: 2>, scalar_prefetch = 0 : i64, scratch_operands = 0 : i64, tpu.core_type = #tpu.core_type<tc>, window_params = [{transform_indices = @transform_0, window_bounds = array<i64: 1, 4, 256>}, {pipeline_mode = #tpu.pipeline_mode<synchronous>, transform_indices = @transform_1, window_bounds = array<i64: 4, 256>}, {pipeline_mode = #tpu.pipeline_mode<synchronous>, transform_indices = @transform_2, window_bounds = array<i64: 4, 4>}, {pipeline_mode = #tpu.pipeline_mode<synchronous>, transform_indices = @transform_3, window_bounds = array<i64: 4, 1>}, {pipeline_mode = #tpu.pipeline_mode<synchronous>, transform_indices = @transform_4, window_bounds = array<i64: 9, 32, 2>}, {pipeline_mode = #tpu.pipeline_mode<synchronous>, transform_indices = @transform_5, window_bounds = array<i64: 32, 1>}, {pipeline_mode = #tpu.pipeline_mode<synchronous>, transform_indices = @transform_6, window_bounds = array<i64: 32, 32>}, {pipeline_mode = #tpu.pipeline_mode<synchronous>, transform_indices = @transform_7, window_bounds = array<i64: 32, 1>}, {pipeline_mode = #tpu.pipeline_mode<synchronous>, transform_indices = @transform_8, window_bounds = array<i64: 9, 4, 32>}, {pipeline_mode = #tpu.pipeline_mode<synchronous>, transform_indices = @transform_9, window_bounds = array<i64: 4, 256>}, {transform_indices = @transform_10, window_bounds = array<i64: 1, 4, 256>}, {transform_indices = @transform_11, window_bounds = array<i64: 1, 1, 1>}]} {
    %c0 = arith.constant 0 : index
    %c0_0 = arith.constant 0 : index
    %c0_1 = arith.constant 0 : index
    %0 = vector.load %arg1[%c0, %c0_0, %c0_1] : memref<1x4x256xf32, #tpu.memory_space<vmem>>, vector<1x4x256xf32>
    %1 = vector.shape_cast %0 : vector<1x4x256xf32> to vector<4x256xf32>
    %c0_2 = arith.constant 0 : index
    %c0_3 = arith.constant 0 : index
    %2 = vector.load %arg3[%c0_2, %c0_3] : memref<4x4xf32, #tpu.memory_space<vmem>>, vector<4x4xf32>
    %cst = arith.constant dense<0.000000e+00> : vector<4x256xf32>
    %3 = tpu.matmul %2, %1, %cst {dimension_numbers = #tpu.dot_dimension_numbers<[1], [0], [0], [1], [0, 0, 1, 1], [], []>} : vector<4x4xf32>, vector<4x256xf32>, vector<4x256xf32> -> vector<4x256xf32>
    %c0_4 = arith.constant 0 : index
    %c0_5 = arith.constant 0 : index
    %4 = vector.load %arg4[%c0_4, %c0_5] : memref<4x1xf32, #tpu.memory_space<vmem>>, vector<4x1xf32>
    %5 = vector.broadcast %4 : vector<4x1xf32> to vector<4x256xf32>
    %6 = arith.addf %3, %5 : vector<4x256xf32>
    %7 = vector.extract_strided_slice %6 {offsets = [0, 0], sizes = [2, 256], strides = [1, 1]} : vector<4x256xf32> to vector<2x256xf32>
    %8 = vector.extract_strided_slice %6 {offsets = [2, 0], sizes = [2, 256], strides = [1, 1]} : vector<4x256xf32> to vector<2x256xf32>
    %c0_6 = arith.constant 0 : index
    %c0_7 = arith.constant 0 : index
    %9 = vector.load %arg2[%c0_6, %c0_7] : memref<4x256xf32, #tpu.memory_space<vmem>>, vector<1x256xf32>
    %c1 = arith.constant 1 : index
    %c0_8 = arith.constant 0 : index
    %10 = vector.load %arg2[%c1, %c0_8] : memref<4x256xf32, #tpu.memory_space<vmem>>, vector<1x256xf32>
    %c2 = arith.constant 2 : index
    %c0_9 = arith.constant 0 : index
    %11 = vector.load %arg2[%c2, %c0_9] : memref<4x256xf32, #tpu.memory_space<vmem>>, vector<1x256xf32>
    %c3 = arith.constant 3 : index
    %c0_10 = arith.constant 0 : index
    %12 = vector.load %arg2[%c3, %c0_10] : memref<4x256xf32, #tpu.memory_space<vmem>>, vector<1x256xf32>
    %13 = arith.mulf %9, %11 : vector<1x256xf32>
    %14 = arith.mulf %9, %12 : vector<1x256xf32>
    %15 = arith.mulf %10, %11 : vector<1x256xf32>
    %16 = arith.mulf %10, %12 : vector<1x256xf32>
    %c0_11 = arith.constant 0 : index
    %c0_12 = arith.constant 0 : index
    %c0_13 = arith.constant 0 : index
    %17 = vector.load %arg5[%c0_11, %c0_12, %c0_13] : memref<9x32x2xf32, #tpu.memory_space<vmem>>, vector<1x32x2xf32>
    %18 = vector.shape_cast %17 : vector<1x32x2xf32> to vector<32x2xf32>
    %c17_i32 = arith.constant 17 : i32
    %19 = tpu.dynamic_rotate %7 by %c17_i32 dim 1 : vector<2x256xf32>, i32 -> vector<2x256xf32>
    %20 = vector.broadcast %13 : vector<1x256xf32> to vector<2x256xf32>
    %21 = arith.mulf %19, %20 : vector<2x256xf32>
    %cst_14 = arith.constant dense<0.000000e+00> : vector<32x256xf32>
    %22 = tpu.matmul %18, %21, %cst_14 {dimension_numbers = #tpu.dot_dimension_numbers<[1], [0], [0], [1], [0, 0, 1, 1], [], []>} : vector<32x2xf32>, vector<2x256xf32>, vector<32x256xf32> -> vector<32x256xf32>
    %c1_15 = arith.constant 1 : index
    %c0_16 = arith.constant 0 : index
    %c0_17 = arith.constant 0 : index
    %23 = vector.load %arg5[%c1_15, %c0_16, %c0_17] : memref<9x32x2xf32, #tpu.memory_space<vmem>>, vector<1x32x2xf32>
    %24 = vector.shape_cast %23 : vector<1x32x2xf32> to vector<32x2xf32>
    %c16_i32 = arith.constant 16 : i32
    %25 = tpu.dynamic_rotate %7 by %c16_i32 dim 1 : vector<2x256xf32>, i32 -> vector<2x256xf32>
    %26 = vector.broadcast %9 : vector<1x256xf32> to vector<2x256xf32>
    %27 = arith.mulf %25, %26 : vector<2x256xf32>
    %cst_18 = arith.constant dense<0.000000e+00> : vector<32x256xf32>
    %28 = tpu.matmul %24, %27, %cst_18 {dimension_numbers = #tpu.dot_dimension_numbers<[1], [0], [0], [1], [0, 0, 1, 1], [], []>} : vector<32x2xf32>, vector<2x256xf32>, vector<32x256xf32> -> vector<32x256xf32>
    %29 = arith.addf %22, %28 : vector<32x256xf32>
    %c2_19 = arith.constant 2 : index
    %c0_20 = arith.constant 0 : index
    %c0_21 = arith.constant 0 : index
    %30 = vector.load %arg5[%c2_19, %c0_20, %c0_21] : memref<9x32x2xf32, #tpu.memory_space<vmem>>, vector<1x32x2xf32>
    %31 = vector.shape_cast %30 : vector<1x32x2xf32> to vector<32x2xf32>
    %c15_i32 = arith.constant 15 : i32
    %32 = tpu.dynamic_rotate %7 by %c15_i32 dim 1 : vector<2x256xf32>, i32 -> vector<2x256xf32>
    %33 = vector.broadcast %14 : vector<1x256xf32> to vector<2x256xf32>
    %34 = arith.mulf %32, %33 : vector<2x256xf32>
    %cst_22 = arith.constant dense<0.000000e+00> : vector<32x256xf32>
    %35 = tpu.matmul %31, %34, %cst_22 {dimension_numbers = #tpu.dot_dimension_numbers<[1], [0], [0], [1], [0, 0, 1, 1], [], []>} : vector<32x2xf32>, vector<2x256xf32>, vector<32x256xf32> -> vector<32x256xf32>
    %36 = arith.addf %29, %35 : vector<32x256xf32>
    %c3_23 = arith.constant 3 : index
    %c0_24 = arith.constant 0 : index
    %c0_25 = arith.constant 0 : index
    %37 = vector.load %arg5[%c3_23, %c0_24, %c0_25] : memref<9x32x2xf32, #tpu.memory_space<vmem>>, vector<1x32x2xf32>
    %38 = vector.shape_cast %37 : vector<1x32x2xf32> to vector<32x2xf32>
    %c1_i32 = arith.constant 1 : i32
    %39 = tpu.dynamic_rotate %7 by %c1_i32 dim 1 : vector<2x256xf32>, i32 -> vector<2x256xf32>
    %40 = vector.broadcast %11 : vector<1x256xf32> to vector<2x256xf32>
    %41 = arith.mulf %39, %40 : vector<2x256xf32>
    %cst_26 = arith.constant dense<0.000000e+00> : vector<32x256xf32>
    %42 = tpu.matmul %38, %41, %cst_26 {dimension_numbers = #tpu.dot_dimension_numbers<[1], [0], [0], [1], [0, 0, 1, 1], [], []>} : vector<32x2xf32>, vector<2x256xf32>, vector<32x256xf32> -> vector<32x256xf32>
    %43 = arith.addf %36, %42 : vector<32x256xf32>
    %c4 = arith.constant 4 : index
    %c0_27 = arith.constant 0 : index
    %c0_28 = arith.constant 0 : index
    %44 = vector.load %arg5[%c4, %c0_27, %c0_28] : memref<9x32x2xf32, #tpu.memory_space<vmem>>, vector<1x32x2xf32>
    %45 = vector.shape_cast %44 : vector<1x32x2xf32> to vector<32x2xf32>
    %cst_29 = arith.constant dense<0.000000e+00> : vector<32x256xf32>
    %46 = tpu.matmul %45, %7, %cst_29 {dimension_numbers = #tpu.dot_dimension_numbers<[1], [0], [0], [1], [0, 0, 1, 1], [], []>} : vector<32x2xf32>, vector<2x256xf32>, vector<32x256xf32> -> vector<32x256xf32>
    %47 = arith.addf %43, %46 : vector<32x256xf32>
    %c5 = arith.constant 5 : index
    %c0_30 = arith.constant 0 : index
    %c0_31 = arith.constant 0 : index
    %48 = vector.load %arg5[%c5, %c0_30, %c0_31] : memref<9x32x2xf32, #tpu.memory_space<vmem>>, vector<1x32x2xf32>
    %49 = vector.shape_cast %48 : vector<1x32x2xf32> to vector<32x2xf32>
    %c255_i32 = arith.constant 255 : i32
    %50 = tpu.dynamic_rotate %7 by %c255_i32 dim 1 : vector<2x256xf32>, i32 -> vector<2x256xf32>
    %51 = vector.broadcast %12 : vector<1x256xf32> to vector<2x256xf32>
    %52 = arith.mulf %50, %51 : vector<2x256xf32>
    %cst_32 = arith.constant dense<0.000000e+00> : vector<32x256xf32>
    %53 = tpu.matmul %49, %52, %cst_32 {dimension_numbers = #tpu.dot_dimension_numbers<[1], [0], [0], [1], [0, 0, 1, 1], [], []>} : vector<32x2xf32>, vector<2x256xf32>, vector<32x256xf32> -> vector<32x256xf32>
    %54 = arith.addf %47, %53 : vector<32x256xf32>
    %c6 = arith.constant 6 : index
    %c0_33 = arith.constant 0 : index
    %c0_34 = arith.constant 0 : index
    %55 = vector.load %arg5[%c6, %c0_33, %c0_34] : memref<9x32x2xf32, #tpu.memory_space<vmem>>, vector<1x32x2xf32>
    %56 = vector.shape_cast %55 : vector<1x32x2xf32> to vector<32x2xf32>
    %c241_i32 = arith.constant 241 : i32
    %57 = tpu.dynamic_rotate %7 by %c241_i32 dim 1 : vector<2x256xf32>, i32 -> vector<2x256xf32>
    %58 = vector.broadcast %15 : vector<1x256xf32> to vector<2x256xf32>
    %59 = arith.mulf %57, %58 : vector<2x256xf32>
    %cst_35 = arith.constant dense<0.000000e+00> : vector<32x256xf32>
    %60 = tpu.matmul %56, %59, %cst_35 {dimension_numbers = #tpu.dot_dimension_numbers<[1], [0], [0], [1], [0, 0, 1, 1], [], []>} : vector<32x2xf32>, vector<2x256xf32>, vector<32x256xf32> -> vector<32x256xf32>
    %61 = arith.addf %54, %60 : vector<32x256xf32>
    %c7 = arith.constant 7 : index
    %c0_36 = arith.constant 0 : index
    %c0_37 = arith.constant 0 : index
    %62 = vector.load %arg5[%c7, %c0_36, %c0_37] : memref<9x32x2xf32, #tpu.memory_space<vmem>>, vector<1x32x2xf32>
    %63 = vector.shape_cast %62 : vector<1x32x2xf32> to vector<32x2xf32>
    %c240_i32 = arith.constant 240 : i32
    %64 = tpu.dynamic_rotate %7 by %c240_i32 dim 1 : vector<2x256xf32>, i32 -> vector<2x256xf32>
    %65 = vector.broadcast %10 : vector<1x256xf32> to vector<2x256xf32>
    %66 = arith.mulf %64, %65 : vector<2x256xf32>
    %cst_38 = arith.constant dense<0.000000e+00> : vector<32x256xf32>
    %67 = tpu.matmul %63, %66, %cst_38 {dimension_numbers = #tpu.dot_dimension_numbers<[1], [0], [0], [1], [0, 0, 1, 1], [], []>} : vector<32x2xf32>, vector<2x256xf32>, vector<32x256xf32> -> vector<32x256xf32>
    %68 = arith.addf %61, %67 : vector<32x256xf32>
    %c8 = arith.constant 8 : index
    %c0_39 = arith.constant 0 : index
    %c0_40 = arith.constant 0 : index
    %69 = vector.load %arg5[%c8, %c0_39, %c0_40] : memref<9x32x2xf32, #tpu.memory_space<vmem>>, vector<1x32x2xf32>
    %70 = vector.shape_cast %69 : vector<1x32x2xf32> to vector<32x2xf32>
    %c239_i32 = arith.constant 239 : i32
    %71 = tpu.dynamic_rotate %7 by %c239_i32 dim 1 : vector<2x256xf32>, i32 -> vector<2x256xf32>
    %72 = vector.broadcast %16 : vector<1x256xf32> to vector<2x256xf32>
    %73 = arith.mulf %71, %72 : vector<2x256xf32>
    %cst_41 = arith.constant dense<0.000000e+00> : vector<32x256xf32>
    %74 = tpu.matmul %70, %73, %cst_41 {dimension_numbers = #tpu.dot_dimension_numbers<[1], [0], [0], [1], [0, 0, 1, 1], [], []>} : vector<32x2xf32>, vector<2x256xf32>, vector<32x256xf32> -> vector<32x256xf32>
    %75 = arith.addf %68, %74 : vector<32x256xf32>
    %c0_42 = arith.constant 0 : index
    %c0_43 = arith.constant 0 : index
    %76 = vector.load %arg6[%c0_42, %c0_43] : memref<32x1xf32, #tpu.memory_space<vmem>>, vector<32x1xf32>
    %77 = vector.broadcast %76 : vector<32x1xf32> to vector<32x256xf32>
    %78 = arith.addf %75, %77 : vector<32x256xf32>
    %cst_44 = arith.constant 0.000000e+00 : f32
    %79 = vector.broadcast %cst_44 : f32 to vector<32x256xf32>
    %80 = arith.maximumf %78, %79 : vector<32x256xf32>
    %c0_45 = arith.constant 0 : index
    %c0_46 = arith.constant 0 : index
    %81 = vector.load %arg7[%c0_45, %c0_46] : memref<32x32xf32, #tpu.memory_space<vmem>>, vector<32x32xf32>
    %cst_47 = arith.constant dense<0.000000e+00> : vector<32x256xf32>
    %82 = tpu.matmul %81, %80, %cst_47 {dimension_numbers = #tpu.dot_dimension_numbers<[1], [0], [0], [1], [0, 0, 1, 1], [], []>} : vector<32x32xf32>, vector<32x256xf32>, vector<32x256xf32> -> vector<32x256xf32>
    %c0_48 = arith.constant 0 : index
    %c0_49 = arith.constant 0 : index
    %83 = vector.load %arg8[%c0_48, %c0_49] : memref<32x1xf32, #tpu.memory_space<vmem>>, vector<32x1xf32>
    %84 = vector.broadcast %83 : vector<32x1xf32> to vector<32x256xf32>
    %85 = arith.addf %82, %84 : vector<32x256xf32>
    %cst_50 = arith.constant 0.000000e+00 : f32
    %86 = vector.broadcast %cst_50 : f32 to vector<32x256xf32>
    %87 = arith.maximumf %85, %86 : vector<32x256xf32>
    %c0_51 = arith.constant 0 : index
    %c0_52 = arith.constant 0 : index
    %88 = vector.load %arg10[%c0_51, %c0_52] : memref<4x256xf32, #tpu.memory_space<vmem>>, vector<4x256xf32>
    %c0_53 = arith.constant 0 : index
    %c0_54 = arith.constant 0 : index
    %c0_55 = arith.constant 0 : index
    %89 = vector.load %arg9[%c0_53, %c0_54, %c0_55] : memref<9x4x32xf32, #tpu.memory_space<vmem>>, vector<1x4x32xf32>
    %90 = vector.shape_cast %89 : vector<1x4x32xf32> to vector<4x32xf32>
    %cst_56 = arith.constant dense<0.000000e+00> : vector<4x256xf32>
    %91 = tpu.matmul %90, %87, %cst_56 {dimension_numbers = #tpu.dot_dimension_numbers<[1], [0], [0], [1], [0, 0, 1, 1], [], []>} : vector<4x32xf32>, vector<32x256xf32>, vector<4x256xf32> -> vector<4x256xf32>
    %c17_i32_57 = arith.constant 17 : i32
    %92 = tpu.dynamic_rotate %91 by %c17_i32_57 dim 1 : vector<4x256xf32>, i32 -> vector<4x256xf32>
    %93 = vector.broadcast %13 : vector<1x256xf32> to vector<4x256xf32>
    %94 = arith.mulf %92, %93 : vector<4x256xf32>
    %95 = arith.addf %88, %94 : vector<4x256xf32>
    %c1_58 = arith.constant 1 : index
    %c0_59 = arith.constant 0 : index
    %c0_60 = arith.constant 0 : index
    %96 = vector.load %arg9[%c1_58, %c0_59, %c0_60] : memref<9x4x32xf32, #tpu.memory_space<vmem>>, vector<1x4x32xf32>
    %97 = vector.shape_cast %96 : vector<1x4x32xf32> to vector<4x32xf32>
    %cst_61 = arith.constant dense<0.000000e+00> : vector<4x256xf32>
    %98 = tpu.matmul %97, %87, %cst_61 {dimension_numbers = #tpu.dot_dimension_numbers<[1], [0], [0], [1], [0, 0, 1, 1], [], []>} : vector<4x32xf32>, vector<32x256xf32>, vector<4x256xf32> -> vector<4x256xf32>
    %c16_i32_62 = arith.constant 16 : i32
    %99 = tpu.dynamic_rotate %98 by %c16_i32_62 dim 1 : vector<4x256xf32>, i32 -> vector<4x256xf32>
    %100 = vector.broadcast %9 : vector<1x256xf32> to vector<4x256xf32>
    %101 = arith.mulf %99, %100 : vector<4x256xf32>
    %102 = arith.addf %95, %101 : vector<4x256xf32>
    %c2_63 = arith.constant 2 : index
    %c0_64 = arith.constant 0 : index
    %c0_65 = arith.constant 0 : index
    %103 = vector.load %arg9[%c2_63, %c0_64, %c0_65] : memref<9x4x32xf32, #tpu.memory_space<vmem>>, vector<1x4x32xf32>
    %104 = vector.shape_cast %103 : vector<1x4x32xf32> to vector<4x32xf32>
    %cst_66 = arith.constant dense<0.000000e+00> : vector<4x256xf32>
    %105 = tpu.matmul %104, %87, %cst_66 {dimension_numbers = #tpu.dot_dimension_numbers<[1], [0], [0], [1], [0, 0, 1, 1], [], []>} : vector<4x32xf32>, vector<32x256xf32>, vector<4x256xf32> -> vector<4x256xf32>
    %c15_i32_67 = arith.constant 15 : i32
    %106 = tpu.dynamic_rotate %105 by %c15_i32_67 dim 1 : vector<4x256xf32>, i32 -> vector<4x256xf32>
    %107 = vector.broadcast %14 : vector<1x256xf32> to vector<4x256xf32>
    %108 = arith.mulf %106, %107 : vector<4x256xf32>
    %109 = arith.addf %102, %108 : vector<4x256xf32>
    %c3_68 = arith.constant 3 : index
    %c0_69 = arith.constant 0 : index
    %c0_70 = arith.constant 0 : index
    %110 = vector.load %arg9[%c3_68, %c0_69, %c0_70] : memref<9x4x32xf32, #tpu.memory_space<vmem>>, vector<1x4x32xf32>
    %111 = vector.shape_cast %110 : vector<1x4x32xf32> to vector<4x32xf32>
    %cst_71 = arith.constant dense<0.000000e+00> : vector<4x256xf32>
    %112 = tpu.matmul %111, %87, %cst_71 {dimension_numbers = #tpu.dot_dimension_numbers<[1], [0], [0], [1], [0, 0, 1, 1], [], []>} : vector<4x32xf32>, vector<32x256xf32>, vector<4x256xf32> -> vector<4x256xf32>
    %c1_i32_72 = arith.constant 1 : i32
    %113 = tpu.dynamic_rotate %112 by %c1_i32_72 dim 1 : vector<4x256xf32>, i32 -> vector<4x256xf32>
    %114 = vector.broadcast %11 : vector<1x256xf32> to vector<4x256xf32>
    %115 = arith.mulf %113, %114 : vector<4x256xf32>
    %116 = arith.addf %109, %115 : vector<4x256xf32>
    %c4_73 = arith.constant 4 : index
    %c0_74 = arith.constant 0 : index
    %c0_75 = arith.constant 0 : index
    %117 = vector.load %arg9[%c4_73, %c0_74, %c0_75] : memref<9x4x32xf32, #tpu.memory_space<vmem>>, vector<1x4x32xf32>
    %118 = vector.shape_cast %117 : vector<1x4x32xf32> to vector<4x32xf32>
    %cst_76 = arith.constant dense<0.000000e+00> : vector<4x256xf32>
    %119 = tpu.matmul %118, %87, %cst_76 {dimension_numbers = #tpu.dot_dimension_numbers<[1], [0], [0], [1], [0, 0, 1, 1], [], []>} : vector<4x32xf32>, vector<32x256xf32>, vector<4x256xf32> -> vector<4x256xf32>
    %120 = arith.addf %116, %119 : vector<4x256xf32>
    %c5_77 = arith.constant 5 : index
    %c0_78 = arith.constant 0 : index
    %c0_79 = arith.constant 0 : index
    %121 = vector.load %arg9[%c5_77, %c0_78, %c0_79] : memref<9x4x32xf32, #tpu.memory_space<vmem>>, vector<1x4x32xf32>
    %122 = vector.shape_cast %121 : vector<1x4x32xf32> to vector<4x32xf32>
    %cst_80 = arith.constant dense<0.000000e+00> : vector<4x256xf32>
    %123 = tpu.matmul %122, %87, %cst_80 {dimension_numbers = #tpu.dot_dimension_numbers<[1], [0], [0], [1], [0, 0, 1, 1], [], []>} : vector<4x32xf32>, vector<32x256xf32>, vector<4x256xf32> -> vector<4x256xf32>
    %c255_i32_81 = arith.constant 255 : i32
    %124 = tpu.dynamic_rotate %123 by %c255_i32_81 dim 1 : vector<4x256xf32>, i32 -> vector<4x256xf32>
    %125 = vector.broadcast %12 : vector<1x256xf32> to vector<4x256xf32>
    %126 = arith.mulf %124, %125 : vector<4x256xf32>
    %127 = arith.addf %120, %126 : vector<4x256xf32>
    %c6_82 = arith.constant 6 : index
    %c0_83 = arith.constant 0 : index
    %c0_84 = arith.constant 0 : index
    %128 = vector.load %arg9[%c6_82, %c0_83, %c0_84] : memref<9x4x32xf32, #tpu.memory_space<vmem>>, vector<1x4x32xf32>
    %129 = vector.shape_cast %128 : vector<1x4x32xf32> to vector<4x32xf32>
    %cst_85 = arith.constant dense<0.000000e+00> : vector<4x256xf32>
    %130 = tpu.matmul %129, %87, %cst_85 {dimension_numbers = #tpu.dot_dimension_numbers<[1], [0], [0], [1], [0, 0, 1, 1], [], []>} : vector<4x32xf32>, vector<32x256xf32>, vector<4x256xf32> -> vector<4x256xf32>
    %c241_i32_86 = arith.constant 241 : i32
    %131 = tpu.dynamic_rotate %130 by %c241_i32_86 dim 1 : vector<4x256xf32>, i32 -> vector<4x256xf32>
    %132 = vector.broadcast %15 : vector<1x256xf32> to vector<4x256xf32>
    %133 = arith.mulf %131, %132 : vector<4x256xf32>
    %134 = arith.addf %127, %133 : vector<4x256xf32>
    %c7_87 = arith.constant 7 : index
    %c0_88 = arith.constant 0 : index
    %c0_89 = arith.constant 0 : index
    %135 = vector.load %arg9[%c7_87, %c0_88, %c0_89] : memref<9x4x32xf32, #tpu.memory_space<vmem>>, vector<1x4x32xf32>
    %136 = vector.shape_cast %135 : vector<1x4x32xf32> to vector<4x32xf32>
    %cst_90 = arith.constant dense<0.000000e+00> : vector<4x256xf32>
    %137 = tpu.matmul %136, %87, %cst_90 {dimension_numbers = #tpu.dot_dimension_numbers<[1], [0], [0], [1], [0, 0, 1, 1], [], []>} : vector<4x32xf32>, vector<32x256xf32>, vector<4x256xf32> -> vector<4x256xf32>
    %c240_i32_91 = arith.constant 240 : i32
    %138 = tpu.dynamic_rotate %137 by %c240_i32_91 dim 1 : vector<4x256xf32>, i32 -> vector<4x256xf32>
    %139 = vector.broadcast %10 : vector<1x256xf32> to vector<4x256xf32>
    %140 = arith.mulf %138, %139 : vector<4x256xf32>
    %141 = arith.addf %134, %140 : vector<4x256xf32>
    %c8_92 = arith.constant 8 : index
    %c0_93 = arith.constant 0 : index
    %c0_94 = arith.constant 0 : index
    %142 = vector.load %arg9[%c8_92, %c0_93, %c0_94] : memref<9x4x32xf32, #tpu.memory_space<vmem>>, vector<1x4x32xf32>
    %143 = vector.shape_cast %142 : vector<1x4x32xf32> to vector<4x32xf32>
    %cst_95 = arith.constant dense<0.000000e+00> : vector<4x256xf32>
    %144 = tpu.matmul %143, %87, %cst_95 {dimension_numbers = #tpu.dot_dimension_numbers<[1], [0], [0], [1], [0, 0, 1, 1], [], []>} : vector<4x32xf32>, vector<32x256xf32>, vector<4x256xf32> -> vector<4x256xf32>
    %c239_i32_96 = arith.constant 239 : i32
    %145 = tpu.dynamic_rotate %144 by %c239_i32_96 dim 1 : vector<4x256xf32>, i32 -> vector<4x256xf32>
    %146 = vector.broadcast %16 : vector<1x256xf32> to vector<4x256xf32>
    %147 = arith.mulf %145, %146 : vector<4x256xf32>
    %148 = arith.addf %141, %147 : vector<4x256xf32>
    %149 = vector.extract_strided_slice %148 {offsets = [0, 0], sizes = [2, 256], strides = [1, 1]} : vector<4x256xf32> to vector<2x256xf32>
    %150 = vector.extract_strided_slice %148 {offsets = [2, 0], sizes = [2, 256], strides = [1, 1]} : vector<4x256xf32> to vector<2x256xf32>
    %cst_97 = arith.constant 0.000000e+00 : f32
    %151 = vector.broadcast %cst_97 : f32 to vector<2x256xf32>
    %152 = arith.minimumf %149, %151 : vector<2x256xf32>
    %153 = math.absf %149 : vector<2x256xf32>
    %cst_98 = arith.constant 0.000000e+00 : f32
    %154 = vector.broadcast %cst_98 : f32 to vector<2x256xf32>
    %155 = arith.subf %154, %153 : vector<2x256xf32>
    %156 = math.exp %155 : vector<2x256xf32>
    %cst_99 = arith.constant 1.000000e+00 : f32
    %157 = vector.broadcast %cst_99 : f32 to vector<2x256xf32>
    %158 = arith.addf %157, %156 : vector<2x256xf32>
    %159 = math.log %158 : vector<2x256xf32>
    %160 = arith.subf %152, %159 : vector<2x256xf32>
    %161 = math.exp %160 : vector<2x256xf32>
    %162 = arith.addf %8, %150 : vector<2x256xf32>
    %163 = arith.mulf %162, %161 : vector<2x256xf32>
    %164 = tpu.concatenate %7, %163 in 0 : vector<2x256xf32>, vector<2x256xf32> -> vector<4x256xf32>
    %c0_100 = arith.constant 0 : index
    %c0_101 = arith.constant 0 : index
    %c0_102 = arith.constant 0 : index
    %165 = vector.load %arg11[%c0_100, %c0_101, %c0_102] : memref<1x4x256xf32, #tpu.memory_space<vmem>>, vector<1x4x256xf32>
    %166 = vector.shape_cast %165 : vector<1x4x256xf32> to vector<4x256xf32>
    %167 = vector.shape_cast %164 : vector<4x256xf32> to vector<1x4x256xf32>
    tpu.vector_store %arg11[%c0_100, %c0_101, %c0_102], %167 {strides = array<i32>} : memref<1x4x256xf32, #tpu.memory_space<vmem>>, vector<1x4x256xf32>,
    %168 = vector.shape_cast %160 : vector<2x256xf32> to vector<1x2x256xf32>
    %cst_103 = arith.constant dense<0.000000e+00> : vector<1xf32>
    %169 = vector.multi_reduction <add>, %168, %cst_103 [1, 2] : vector<1x2x256xf32> to vector<1xf32>
    %170 = vector.shape_cast %169 : vector<1xf32> to vector<1x1x1xf32>
    %171 = vector.extract %170[0, 0, 0] : f32 from vector<1x1x1xf32>
    %172 = vector.broadcast %171 : f32 to vector<1x1x1xf32>
    %c0_104 = arith.constant 0 : index
    %c0_105 = arith.constant 0 : index
    %c0_106 = arith.constant 0 : index
    %173 = vector.load %arg12[%c0_104, %c0_105, %c0_106] : memref<1x1x1xf32, #tpu.memory_space<vmem>>, vector<1x1x1xf32>
    tpu.vector_store %arg12[%c0_104, %c0_105, %c0_106], %172 {strides = array<i32>} : memref<1x1x1xf32, #tpu.memory_space<vmem>>, vector<1x1x1xf32>,
    return
  }
  func.func @transform_0(%arg0: i32) -> (i32, i32, i32) {
    %c0_i32 = arith.constant 0 : i32
    %c0_i32_0 = arith.constant 0 : i32
    %c0_i32_1 = arith.constant 0 : i32
    return %arg0, %c0_i32, %c0_i32_0 : i32, i32, i32
  }
  func.func @transform_1(%arg0: i32) -> (i32, i32) {
    %c0_i32 = arith.constant 0 : i32
    %c0_i32_0 = arith.constant 0 : i32
    %c0_i32_1 = arith.constant 0 : i32
    return %c0_i32, %c0_i32_0 : i32, i32
  }
  func.func @transform_2(%arg0: i32) -> (i32, i32) {
    %c0_i32 = arith.constant 0 : i32
    %c0_i32_0 = arith.constant 0 : i32
    %c0_i32_1 = arith.constant 0 : i32
    return %c0_i32, %c0_i32_0 : i32, i32
  }
  func.func @transform_3(%arg0: i32) -> (i32, i32) {
    %c0_i32 = arith.constant 0 : i32
    %c0_i32_0 = arith.constant 0 : i32
    %c0_i32_1 = arith.constant 0 : i32
    return %c0_i32, %c0_i32_0 : i32, i32
  }
  func.func @transform_4(%arg0: i32) -> (i32, i32, i32) {
    %c0_i32 = arith.constant 0 : i32
    %c0_i32_0 = arith.constant 0 : i32
    %c0_i32_1 = arith.constant 0 : i32
    %c0_i32_2 = arith.constant 0 : i32
    return %c0_i32, %c0_i32_0, %c0_i32_1 : i32, i32, i32
  }
  func.func @transform_5(%arg0: i32) -> (i32, i32) {
    %c0_i32 = arith.constant 0 : i32
    %c0_i32_0 = arith.constant 0 : i32
    %c0_i32_1 = arith.constant 0 : i32
    return %c0_i32, %c0_i32_0 : i32, i32
  }
  func.func @transform_6(%arg0: i32) -> (i32, i32) {
    %c0_i32 = arith.constant 0 : i32
    %c0_i32_0 = arith.constant 0 : i32
    %c0_i32_1 = arith.constant 0 : i32
    return %c0_i32, %c0_i32_0 : i32, i32
  }
  func.func @transform_7(%arg0: i32) -> (i32, i32) {
    %c0_i32 = arith.constant 0 : i32
    %c0_i32_0 = arith.constant 0 : i32
    %c0_i32_1 = arith.constant 0 : i32
    return %c0_i32, %c0_i32_0 : i32, i32
  }
  func.func @transform_8(%arg0: i32) -> (i32, i32, i32) {
    %c0_i32 = arith.constant 0 : i32
    %c0_i32_0 = arith.constant 0 : i32
    %c0_i32_1 = arith.constant 0 : i32
    %c0_i32_2 = arith.constant 0 : i32
    return %c0_i32, %c0_i32_0, %c0_i32_1 : i32, i32, i32
  }
  func.func @transform_9(%arg0: i32) -> (i32, i32) {
    %c0_i32 = arith.constant 0 : i32
    %c0_i32_0 = arith.constant 0 : i32
    %c0_i32_1 = arith.constant 0 : i32
    return %c0_i32, %c0_i32_0 : i32, i32
  }
  func.func @transform_10(%arg0: i32) -> (i32, i32, i32) {
    %c0_i32 = arith.constant 0 : i32
    %c0_i32_0 = arith.constant 0 : i32
    %c0_i32_1 = arith.constant 0 : i32
    return %arg0, %c0_i32, %c0_i32_0 : i32, i32, i32
  }
  func.func @transform_11(%arg0: i32) -> (i32, i32, i32) {
    %c0_i32 = arith.constant 0 : i32
    %c0_i32_0 = arith.constant 0 : i32
    %c0_i32_1 = arith.constant 0 : i32
    return %arg0, %c0_i32, %c0_i32_0 : i32, i32, i32
  }
}

</mosaic_0001>

<bundles_post_ra>
// kernel: tpu_custom_call.1
= control target key start
LH: loop header
LB: loop body
LE: loop exit
PB: predicated region body
PF: predicated region fallthrough
CT: control target
= control target key end

     0   :  { %s3307_s0 = inlined_call_operand.vmem [shape: f32[2,4,256], index: 0, kind: input, shape index: {}]   ;;  %s3308_s1 = inlined_call_operand.vmem [shape: f32[4,256], index: 1, kind: input, shape index: {}]   ;;  %s3309_s2 = inlined_call_operand.vmem [shape: f32[4,4], index: 2, kind: input, shape index: {}]   ;;  %s3310_s3 = inlined_call_operand.vmem [shape: f32[4,1], index: 3, kind: input, shape index: {}]   ;;  %s3311_s4 = inlined_call_operand.vmem [shape: f32[9,32,2], index: 4, kind: input, shape index: {}]   ;;  %s3312_s5 = inlined_call_operand.vmem [shape: f32[32,1], index: 5, kind: input, shape index: {}]   ;;  %s3313_s6 = inlined_call_operand.vmem [shape: f32[32,32], index: 6, kind: input, shape index: {}]   ;;  %s3314_s7 = inlined_call_operand.vmem [shape: f32[32,1], index: 7, kind: input, shape index: {}]   ;;  %s3315_s8 = inlined_call_operand.vmem [shape: f32[9,4,32], index: 8, kind: input, shape index: {}]   ;;  %s3316_s9 = inlined_call_operand.vmem [shape: f32[4,256], index: 9, kind: input, shape index: {}]   ;;  %s3317_s10 = inlined_call_operand.hbm [shape: f32[2,4,256], index: 10, kind: output, shape index: {0}]   ;;  %s3318_s11 = inlined_call_operand.vmem [shape: f32[2,1,1], index: 11, kind: output, shape index: {1}]  }
   0x1   :  { %3359 = sst [smem:[#allocation10_spill]] %s3307_s0 }
   0x2   :  { %3360 = sst [smem:[#allocation11_spill]] %s3308_s1 }
   0x3   :  { %3361 = sst [smem:[#allocation12_spill]] %s3309_s2 }
   0x4   :  { %3362 = sst [smem:[#allocation13_spill]] %s3310_s3 }
   0x5   :  { %3363 = sst [smem:[#allocation14_spill]] %s3311_s4 }
   0x6   :  { %3364 = sst [smem:[#allocation15_spill]] %s3312_s5 }
   0x7   :  { %17 = vsyncpa [#allocation3], 0 }
   0x8   :  { %19 = vsyncpa [#allocation3 + $0x1], 0  ;;  %s2564_s17 = smov 0   ;;  %s2566_s18 = smov 0  }
   0x9   :  { %s2568_s19 = smov 0   ;;  %s2570_s20 = smov 0  }
   0xa LB: > { %s2585_s21 = sadd.s32 4294967295, %s2493_s20   ;;  %s2195_s22 = sadd.s32 4294967294, %s2493_s20   ;;  %s2493_s20 = sphi %s2570_s20, %s3409_s20   ;;  %s2489_s19 = sphi %s2568_s19, %s3408_s19   ;;  %s2485_s18 = sphi %s2566_s18, %s3407_s18   ;;  %s2481_s17 = sphi %s2564_s17, %s3406_s17  }
   0xb   : > { %s2589_s23 = sadd.s32 1, %s2493_s20   ;;  %s247_s24 = sadd.s32 1, %s2489_s19 }
   0xc   : > { %s244_s25 = ssub.s32 %s2493_s20, %s2589_s23  ;;  %p257_p0 = scmp.ne.s32.totalorder %s2489_s19, %s2485_s18 }
   0xd   : > { %p245_p1 = scmp.eq.s32.totalorder %s244_s25, 0  ;;  %p258_p2 = scmp.eq.s32.totalorder %s2585_s21, 1 }
   0xe   : > { %p263_p3 = scmp.ne.s32.totalorder %s2485_s18, %s2481_s17  ;;  %p264_p4 = scmp.eq.s32.totalorder %s2195_s22, 1 }
   0xf   : > { %s2600_s26 = scalar_select %p245_p1, %s2489_s19, %s247_s24  }
  0x10   : > { %p2602_p5 = por %p258_p2, %p257_p0  ;;  %p2606_p6 = por %p264_p4, %p263_p3 }
  0x11   : > { %p2198_p7 = scmp.ge.s32.totalorder %s2493_s20, 1  ;;  %p343_p8 = scmp.lt.s32.totalorder %s2493_s20, 3 }
  0x13   : > { %p344_p9 = pnand %p2198_p7, %p343_p8 }
  0x15   : > { %347 = sbr.rel (%p344_p9) target bundleno = 1281 (0x501), region = 60 }
  0x1a   : > { %p386_p10 = scmp.lt.s32.totalorder %s2585_s21, 1  ;;  %v2495_v0 = vmov 0   ;;  %s3367_s3 = sld [smem:[#allocation13_spill]]  ;;  %vm410_vm0 = vcmask 1043456   ;;  %vm406_vm1 = vcmask 31744   ;;  %v1413_v12 = vld [vmem:[%s3314_s7 + $0x18] sm:$0xff]  ;;  %v474_v14 = vlaneseq }
  0x1b   : > { %2422 = vset.pattern.permute.xlu0 %v2495_v0  ;;  %2424 = vset.pattern.permute.xlu1 %v2495_v0  ;;  %s3368_s0 = sld [smem:[#allocation10_spill]]  ;;  %s3325_s25 = smov 15   ;;  %v1410_v13 = vld [vmem:[%s3314_s7] sm:$0xff]  ;;  %vm518_vm3 = vcmask 1041408   ;;  %vm505_vm4 = vcmask 15360   ;;  %vm1434_vm12 = vcmask 261120  }
  0x1c   : > { %s2617_s12 = scalar_select %p386_p10, %s2585_s21, 1  ;;  %2423 = vset.pattern.permute.xlu2 %v2495_v0  ;;  %v2673_v16 = vand.u32 127, %v474_v14 }
  0x1d   : > { %s3369_s2 = sld [smem:[#allocation12_spill]]  ;;  %s2497_s29 = smov 16  }
  0x1e   : > { %s2370_s13 = sshll.u32 %s2617_s12, 3  ;;  %s3327_s30 = smov 17   ;;  %vm495_vm2 = vcmp.lt.s32.totalorder %v2673_v16, 16  ;;  %vm668_vm5 = vcmp.lt.s32.totalorder %v2673_v16, 15  ;;  %vm476_vm6 = vcmp.lt.s32.totalorder %v2673_v16, 17  ;;  %vm771_vm7 = vcmp.lt.s32.totalorder %v2673_v16, 1 }
  0x1f   : > { %s3321_s14 = smov 113   ;;  %s3323_s15 = smov 127   ;;  %vm963_vm8 = vcmp.lt.s32.totalorder %v2673_v16, 127  ;;  %vm1066_vm9 = vcmp.lt.s32.totalorder %v2673_v16, 113  ;;  %vm1169_vm10 = vcmp.lt.s32.totalorder %v2673_v16, 112  ;;  %vm1272_vm11 = vcmp.lt.s32.totalorder %v2673_v16, 111 }
  0x20   : > { %v396_v1 = vld [vmem:[%s3367_s3] sm:$0xf]  ;;  %s3331_s22 = smov 112   ;;  %s3372_s5 = sld [smem:[#allocation15_spill]] }
  0x21   : > { %399 = vperm.xlu0 %2422, %v396_v1   ;;  %s390_s16 = scalar_lea.vmem %s3368_s0, %s2370_s13  ;;  %s3319_s13 = smov 1  }
  0x22   : > { %v394_v2 = vld [vmem:[%s390_s16] sm:$0xff]  ;;  %s3329_s16 = smov 111   ;;  %s3373_s1 = sld [smem:[#allocation11_spill]] }
  0x23   : > { %403 = vst [vmem:[#allocation1] ss:$2 sm:$0xff] %v394_v2  ;;  %v395_v3 = vld [vmem:[%s3369_s2] sm:$0xf]  ;;  %s3374_s4 = sld [smem:[#allocation14_spill]]  ;;  %s3384_s24 = smov 111  }
  0x26   : > { %v1368_v11 = vld [vmem:[%s3372_s5 + $0x10] sm:$0xff] }
  0x28   : > { %v2678_v17 = vld [vmem:[%s3373_s1] ss:$4 sm:$0x3]  ;;  %v2686_v20 = vld [vmem:[%s3373_s1 + $0x3] ss:$4 sm:$0x3] }
  0x29   : > { %v3343_v18 = vperm.slane %v2678_v17, 0  ;;  %v3347_v19 = vperm.slane %v2678_v17, 1  ;;  %v2691_v22 = vld [vmem:[%s3373_s1 + $0x2] ss:$4 sm:$0x3]  ;;  %v2699_v26 = vmul.f32 %v2686_v20, %v2678_v17  ;;  %v2210_v46 = vld [vmem:[%s3374_s4 + $0x28] sm:$0xff] }
  0x2a   : > { %v404_v4 = vld.sshfl [vmem:[#allocation1] sm:$0xff pattern:$0x75316420]  ;;  %v405_v5 = vld.sshfl [vmem:[#allocation1 + $0x8] sm:$0xff pattern:$0x75316420]  ;;  %v2710_v30 = vmul.f32 %v2691_v22, %v2678_v17 }
  0x2b   : > { %2202 = vmatpush.msk.msra.mxu0 %vm410_vm0, %v404_v4  ;;  %2204 = vmatpush.msk.msra.mxu1 %vm410_vm0, %v405_v5  ;;  %v2209_v29 = vld [vmem:[%s3374_s4 + $0x20] sm:$0xff]  ;;  %v3342_v32 = vperm.slane %v2699_v26, 0  ;;  %v3345_v33 = vperm.slane %v2699_v26, 1  ;;  %v3341_v48 = vperm.slane %v2691_v22, 0  ;;  %v3344_v49 = vperm.slane %v2691_v22, 1  ;;  %v2211_v57 = vld [vmem:[%s3374_s4 + $0x30] sm:$0xff] }
  0x2c   : > { %2203 = vmatmul.msk.f32.vlgmr.msra.gmra.mxu0 %vm406_vm1, %v395_v3  ;;  %2205 = vmatmul.msk.f32.vlgmr.msra.gmra.mxu1 %vm406_vm1, %v395_v3  ;;  %v3346_v34 = vperm.slane %v2710_v30, 0  ;;  %v3348_v35 = vperm.slane %v2710_v30, 1  ;;  %v466_v47 = vld [vmem:[%s3374_s4] sm:$0xff]  ;;  %v467_v58 = vld [vmem:[%s3374_s4 + $0x8] sm:$0xff]  ;;  %v3338_v59 = vperm.slane %v2686_v20, 0  ;;  %v3340_v60 = vperm.slane %v2686_v20, 1 }
  0x2d   : > { %v2789_v2 = vld [vmem:[%s3373_s1 + $0x1] ss:$4 sm:$0x3]  ;;  %v2212_v5 = vld [vmem:[%s3374_s4 + $0x38] sm:$0xff] }
  0x2e   : > { %3375 = vst [vmem:[#allocation7_spill] sm:$0xff] %v2789_v2 }
  0x93   : > { %v400_v6 = vpop.permute.xlu0 %399 }
  0xa9   : > { %v432_v7 = vpop.f32.mrf.mxu0  ;;  %v452_v8 = vpop.f32.mrf.mxu1 }
  0xaa   : > { %v2628_v9 = vadd.f32 %v432_v7, %v400_v6  ;;  %v2630_v10 = vadd.f32 %v452_v8, %v400_v6  ;;  %v468_v6 = vld [vmem:[%s3374_s4 + $0x10] sm:$0xff]  ;;  %v2805_v7 = vmul.f32 %v2691_v22, %v2789_v2 }
  0xac   : > { %3370 = vst [vmem:[#allocation5_spill] sm:$0xff] %v2628_v9  ;;  %666 = vrot.lane.b32.xlu2 %v2630_v10, %s3325_s25  ;;  %493 = vrot.lane.b32.xlu1 %v2630_v10, %s2497_s29 }
  0xad   : > { %3371 = vst [vmem:[#allocation6_spill] sm:$0xff] %v2630_v10  ;;  %491 = vrot.lane.b32.xlu0 %v2628_v9, %s2497_s29 }
  0xae   : > { %3376 = vst [vmem:[#allocation8_spill] sm:$0xff] %v2805_v7 }
  0xb4   : > { %470 = vrot.lane.b32.xlu2 %v2628_v9, %s3327_s30  ;;  %664 = vrot.lane.b32.xlu1 %v2628_v9, %s3325_s25  ;;  %s3378_s25 = smov 17  }
  0xb5   : > { %472 = vrot.lane.b32.xlu0 %v2630_v10, %s3327_s30  ;;  %s3379_s30 = smov 15  }
  0xbc   : > { %769 = vrot.lane.b32.xlu2 %v2630_v10, %s3319_s13  ;;  %767 = vrot.lane.b32.xlu1 %v2628_v9, %s3319_s13  ;;  %s3383_s13 = smov 112  }
  0xbd   : > { %1062 = vrot.lane.b32.xlu0 %v2628_v9, %s3321_s14 }
  0xc4   : > { %959 = vrot.lane.b32.xlu2 %v2628_v9, %s3323_s15  ;;  %1064 = vrot.lane.b32.xlu1 %v2630_v10, %s3321_s14 }
  0xc5   : > { %961 = vrot.lane.b32.xlu0 %v2630_v10, %s3323_s15 }
  0xcc   : > { %1270 = vrot.lane.b32.xlu2 %v2630_v10, %s3329_s16  ;;  %1268 = vrot.lane.b32.xlu1 %v2628_v9, %s3329_s16  ;;  %s3380_s16 = smov 1  }
  0xcd   : > { %1165 = vrot.lane.b32.xlu0 %v2628_v9, %s3331_s22 }
  0xd4   : > { %1167 = vrot.lane.b32.xlu1 %v2630_v10, %s3331_s22  ;;  %s3382_s22 = smov 113  }
  0xd5   : > { %1382 = vperm.xlu0 %2422, %v1368_v11   ;;  %v3336_v11 = vperm.slane %v2805_v7, 0 }
  0xdd   : > { %1431 = vperm.xlu0 %2422, %v1413_v12   ;;  %v3339_v12 = vperm.slane %v2805_v7, 1 }
  0xe5   : > { %1416 = vperm.xlu0 %2422, %v1410_v13  }
 0x106   : > { %v667_v15 = vpop.permute.xlu2 %666 }
 0x10e   : > { %v471_v31 = vpop.permute.xlu2 %470 }
 0x116   : > { %v770_v50 = vpop.permute.xlu2 %769 }
 0x11e   : > { %v494_v21 = vpop.permute.xlu1 %493  ;;  %v960_v62 = vpop.permute.xlu2 %959 }
 0x11f   : > { %v492_v23 = vpop.permute.xlu0 %491 }
 0x120   : > { %v496_v24 = vsel %vm495_vm2, %v492_v23, %v494_v21  ;;  %v497_v25 = vsel %vm495_vm2, %v494_v21, %v492_v23  ;;  %v469_v21 = vld [vmem:[%s3374_s4 + $0x18] sm:$0xff] }
 0x121   : > { %v503_v27 = vmul.f32 %v3343_v18, %v497_v25  ;;  %v504_v28 = vmul.f32 %v3347_v19, %v496_v24 }
 0x123   : > { %2213 = vmatpush.msk.msra.mxu2 %vm518_vm3, %v503_v27  ;;  %2218 = vmatpush.msk.msra.mxu3 %vm518_vm3, %v504_v28  ;;  %v3335_v27 = vperm.slane %v2789_v2, 0  ;;  %v3337_v28 = vperm.slane %v2789_v2, 1 }
 0x124   : > { %2214 = vmatmul.msk.f32.vlgmr.msra.gmra.mxu2 %vm505_vm4, %v2209_v29  ;;  %2219 = vmatmul.msk.f32.vlgmr.msra.gmra.mxu3 %vm505_vm4, %v2209_v29 }
 0x126   : > { %v665_v36 = vpop.permute.xlu1 %664 }
 0x127   : > { %v669_v37 = vsel %vm668_vm5, %v665_v36, %v667_v15  ;;  %v670_v38 = vsel %vm668_vm5, %v667_v15, %v665_v36  ;;  %v473_v39 = vpop.permute.xlu0 %472  ;;  %v2233_v15 = vld [vmem:[%s3374_s4 + $0x40] sm:$0xff] }
 0x128   : > { %v676_v40 = vmul.f32 %v3342_v32, %v670_v38  ;;  %v677_v41 = vmul.f32 %v3345_v33, %v669_v37  ;;  %v477_v42 = vsel %vm476_vm6, %v471_v31, %v473_v39  ;;  %v478_v43 = vsel %vm476_vm6, %v473_v39, %v471_v31  ;;  %v2234_v37 = vld [vmem:[%s3374_s4 + $0x48] sm:$0xff] }
 0x129   : > { %v484_v44 = vmul.f32 %v3346_v34, %v478_v43  ;;  %v485_v45 = vmul.f32 %v3348_v35, %v477_v42  ;;  %v2248_v42 = vld [vmem:[%s3374_s4 + $0x68] sm:$0xff]  ;;  %v2236_v43 = vld [vmem:[%s3374_s4 + $0x58] sm:$0xff] }
 0x12a   : > { %2237 = vmatpush.msk.msrb.mxu2 %vm518_vm3, %v676_v40  ;;  %2242 = vmatpush.msk.msrb.mxu3 %vm518_vm3, %v677_v41  ;;  %v2247_v40 = vld [vmem:[%s3374_s4 + $0x60] sm:$0xff]  ;;  %v2235_v41 = vld [vmem:[%s3374_s4 + $0x50] sm:$0xff] }
 0x12b   : > { %2223 = vmatpush.msk.msrb.mxu0 %vm518_vm3, %v484_v44  ;;  %2228 = vmatpush.msk.msrb.mxu1 %vm518_vm3, %v485_v45  ;;  %v2249_v44 = vld [vmem:[%s3374_s4 + $0x70] sm:$0xff]  ;;  %v2875_v45 = vmul.f32 %v2686_v20, %v2789_v2 }
 0x12c   : > { %2215 = vmatmul.msk.f32.gmra.mxu2 %vm505_vm4, %v2210_v46  ;;  %2220 = vmatmul.msk.f32.gmra.mxu3 %vm505_vm4, %v2210_v46  ;;  %v1271_v46 = vpop.permute.xlu2 %1270 }
 0x12d   : > { %2224 = vmatmul.msk.f32.vlgmr.msrb.gmra.mxu0 %vm505_vm4, %v466_v47  ;;  %2229 = vmatmul.msk.f32.vlgmr.msrb.gmra.mxu1 %vm505_vm4, %v466_v47  ;;  %3377 = vst [vmem:[#allocation9_spill] sm:$0xff] %v2875_v45  ;;  %v3333_v47 = vperm.slane %v2875_v45, 0 }
 0x12e   : > { %2265 = vmatpush.msk.msra.mxu2 %vm518_vm3, %v2628_v9  ;;  %2270 = vmatpush.msk.msra.mxu3 %vm518_vm3, %v2630_v10  ;;  %v768_v51 = vpop.permute.xlu1 %767 }
 0x12f   : > { %v772_v52 = vsel %vm771_vm7, %v768_v51, %v770_v50  ;;  %v773_v53 = vsel %vm771_vm7, %v770_v50, %v768_v51  ;;  %v1063_v54 = vpop.permute.xlu0 %1062  ;;  %v3334_v50 = vperm.slane %v2875_v45, 1 }
 0x130   : > { %v779_v55 = vmul.f32 %v3341_v48, %v773_v53  ;;  %v780_v56 = vmul.f32 %v3344_v49, %v772_v52  ;;  %v2261_v53 = vld [vmem:[%s3374_s4 + $0x80] sm:$0xff] }
 0x132   : > { %2251 = vmatpush.msk.msra.mxu0 %vm518_vm3, %v779_v55  ;;  %2256 = vmatpush.msk.msra.mxu1 %vm518_vm3, %v780_v56 }
 0x134   : > { %2216 = vmatmul.msk.f32.gmra.mxu2 %vm505_vm4, %v2211_v57  ;;  %2221 = vmatmul.msk.f32.gmra.mxu3 %vm505_vm4, %v2211_v57  ;;  %v2262_v57 = vld [vmem:[%s3374_s4 + $0x88] sm:$0xff] }
 0x135   : > { %2225 = vmatmul.msk.f32.gmra.mxu0 %vm505_vm4, %v467_v58  ;;  %2230 = vmatmul.msk.f32.gmra.mxu1 %vm505_vm4, %v467_v58  ;;  %v2275_v58 = vld [vmem:[%s3374_s4 + $0xa0] sm:$0xff] }
 0x136   : > { %v1065_v61 = vpop.permute.xlu1 %1064 }
 0x137   : > { %v962_v63 = vpop.permute.xlu0 %961  ;;  %v1067_v13 = vsel %vm1066_vm9, %v1063_v54, %v1065_v61  ;;  %v1068_v14 = vsel %vm1066_vm9, %v1065_v61, %v1063_v54  ;;  %v2250_v54 = vld [vmem:[%s3374_s4 + $0x78] sm:$0xff]  ;;  %v2263_v61 = vld [vmem:[%s3374_s4 + $0x90] sm:$0xff] }
 0x138   : > { %v964_v0 = vsel %vm963_vm8, %v960_v62, %v962_v63  ;;  %v965_v1 = vsel %vm963_vm8, %v962_v63, %v960_v62  ;;  %v1074_v23 = vmul.f32 %v3336_v11, %v1067_v13  ;;  %v1075_v24 = vmul.f32 %v3339_v12, %v1068_v14  ;;  %v2276_v62 = vld [vmem:[%s3374_s4 + $0xa8] sm:$0xff]  ;;  %v2264_v63 = vld [vmem:[%s3374_s4 + $0x98] sm:$0xff]  ;;  %v2305_v14 = vld [vmem:[%s3374_s4 + $0xf0] sm:$0xff] }
 0x139   : > { %v971_v3 = vmul.f32 %v3338_v59, %v964_v0  ;;  %v972_v4 = vmul.f32 %v3340_v60, %v965_v1  ;;  %v2277_v0 = vld [vmem:[%s3374_s4 + $0xb0] sm:$0xff]  ;;  %v2289_v1 = vld [vmem:[%s3374_s4 + $0xc0] sm:$0xff]  ;;  %v2292_v13 = vld [vmem:[%s3374_s4 + $0xd8] sm:$0xff] }
 0x13b   : > { %2279 = vmatpush.msk.msrb.mxu0 %vm518_vm3, %v971_v3  ;;  %2284 = vmatpush.msk.msrb.mxu1 %vm518_vm3, %v972_v4  ;;  %v2278_v3 = vld [vmem:[%s3374_s4 + $0xb8] sm:$0xff]  ;;  %v2290_v4 = vld [vmem:[%s3374_s4 + $0xc8] sm:$0xff] }
 0x13c   : > { %2217 = vmatmul.msk.f32.gmra.mxu2 %vm505_vm4, %v2212_v5  ;;  %2222 = vmatmul.msk.f32.gmra.mxu3 %vm505_vm4, %v2212_v5  ;;  %v2303_v5 = vld [vmem:[%s3374_s4 + $0xe0] sm:$0xff] }
 0x13d   : > { %2226 = vmatmul.msk.f32.gmra.mxu0 %vm505_vm4, %v468_v6  ;;  %2231 = vmatmul.msk.f32.gmra.mxu1 %vm505_vm4, %v468_v6  ;;  %v2291_v6 = vld [vmem:[%s3374_s4 + $0xd0] sm:$0xff] }
 0x13e   : > { %v1269_v8 = vpop.permute.xlu1 %1268 }
 0x13f   : > { %v1166_v25 = vpop.permute.xlu0 %1165  ;;  %v1273_v51 = vsel %vm1272_vm11, %v1269_v8, %v1271_v46  ;;  %v1274_v52 = vsel %vm1272_vm11, %v1271_v46, %v1269_v8  ;;  %v2304_v8 = vld [vmem:[%s3374_s4 + $0xe8] sm:$0xff] }
 0x140   : > { %v1280_v55 = vmul.f32 %v3333_v47, %v1273_v51  ;;  %v1281_v56 = vmul.f32 %v3334_v50, %v1274_v52  ;;  %v1412_v51 = vld [vmem:[%s3314_s7 + $0x10] sm:$0xff] }
 0x144   : > { %2238 = vmatmul.msk.f32.vlgmr.msrb.gmra.mxu2 %vm505_vm4, %v2233_v15  ;;  %2243 = vmatmul.msk.f32.vlgmr.msrb.gmra.mxu3 %vm505_vm4, %v2233_v15  ;;  %v1367_v15 = vld [vmem:[%s3372_s5 + $0x8] sm:$0xff] }
 0x145   : > { %2227 = vmatmul.msk.f32.gmra.mxu0 %vm505_vm4, %v469_v21  ;;  %2232 = vmatmul.msk.f32.gmra.mxu1 %vm505_vm4, %v469_v21  ;;  %v2317_v21 = vld [vmem:[%s3374_s4 + $0x100] sm:$0xff] }
 0x146   : > { %2293 = vmatpush.msk.msrb.mxu2 %vm518_vm3, %v1074_v23  ;;  %2298 = vmatpush.msk.msrb.mxu3 %vm518_vm3, %v1075_v24  ;;  %v1168_v29 = vpop.permute.xlu1 %1167  ;;  %v2306_v23 = vld [vmem:[%s3374_s4 + $0xf8] sm:$0xff] }
 0x147   : > { %v1170_v31 = vsel %vm1169_vm10, %v1166_v25, %v1168_v29  ;;  %v1171_v36 = vsel %vm1169_vm10, %v1168_v29, %v1166_v25  ;;  %1377 = vperm.xlu1 %2424, %v1367_v15   ;;  %v1369_v24 = vld [vmem:[%s3372_s5 + $0x18] sm:$0xff] }
 0x148   : > { %v1177_v38 = vmul.f32 %v3335_v27, %v1170_v31  ;;  %v1178_v39 = vmul.f32 %v3337_v28, %v1171_v36  ;;  %1387 = vperm.xlu2 %2423, %v1369_v24   ;;  %v2318_v31 = vld [vmem:[%s3374_s4 + $0x108] sm:$0xff] }
 0x14c   : > { %2239 = vmatmul.msk.f32.gmra.mxu2 %vm505_vm4, %v2234_v37  ;;  %2244 = vmatmul.msk.f32.gmra.mxu3 %vm505_vm4, %v2234_v37 }
 0x14d   : > { %2252 = vmatmul.msk.f32.vlgmr.msra.gmra.mxu0 %vm505_vm4, %v2247_v40  ;;  %2257 = vmatmul.msk.f32.vlgmr.msra.gmra.mxu1 %vm505_vm4, %v2247_v40 }
 0x14e   : > { %2307 = vmatpush.msk.msra.mxu0 %vm518_vm3, %v1177_v38  ;;  %2312 = vmatpush.msk.msra.mxu1 %vm518_vm3, %v1178_v39  ;;  %v1366_v38 = vld [vmem:[%s3372_s5] sm:$0xff] }
 0x14f   : > { %1426 = vperm.xlu1 %2424, %v1412_v51  }
 0x150   : > { %1372 = vperm.xlu2 %2423, %v1366_v38  }
 0x154   : > { %2240 = vmatmul.msk.f32.gmra.mxu2 %vm505_vm4, %v2235_v41  ;;  %2245 = vmatmul.msk.f32.gmra.mxu3 %vm505_vm4, %v2235_v41  ;;  %v2319_v41 = vld [vmem:[%s3374_s4 + $0x110] sm:$0xff] }
 0x155   : > { %2253 = vmatmul.msk.f32.gmra.mxu0 %vm505_vm4, %v2248_v42  ;;  %2258 = vmatmul.msk.f32.gmra.mxu1 %vm505_vm4, %v2248_v42 }
 0x15c   : > { %2241 = vmatmul.msk.f32.gmra.mxu2 %vm505_vm4, %v2236_v43  ;;  %2246 = vmatmul.msk.f32.gmra.mxu3 %vm505_vm4, %v2236_v43 }
 0x15d   : > { %2254 = vmatmul.msk.f32.gmra.mxu0 %vm505_vm4, %v2249_v44  ;;  %2259 = vmatmul.msk.f32.gmra.mxu1 %vm505_vm4, %v2249_v44 }
 0x164   : > { %2266 = vmatmul.msk.f32.vlgmr.msra.gmra.mxu2 %vm505_vm4, %v2261_v53  ;;  %2271 = vmatmul.msk.f32.vlgmr.msra.gmra.mxu3 %vm505_vm4, %v2261_v53 }
 0x165   : > { %2255 = vmatmul.msk.f32.gmra.mxu0 %vm505_vm4, %v2250_v54  ;;  %2260 = vmatmul.msk.f32.gmra.mxu1 %vm505_vm4, %v2250_v54  ;;  %v2320_v54 = vld [vmem:[%s3374_s4 + $0x118] sm:$0xff] }
 0x166   : > { %2321 = vmatpush.msk.msra.mxu2 %vm518_vm3, %v1280_v55  ;;  %2326 = vmatpush.msk.msra.mxu3 %vm518_vm3, %v1281_v56 }
 0x16c   : > { %2267 = vmatmul.msk.f32.gmra.mxu2 %vm505_vm4, %v2262_v57  ;;  %2272 = vmatmul.msk.f32.gmra.mxu3 %vm505_vm4, %v2262_v57 }
 0x16d   : > { %2280 = vmatmul.msk.f32.vlgmr.msrb.gmra.mxu0 %vm505_vm4, %v2275_v58  ;;  %2285 = vmatmul.msk.f32.vlgmr.msrb.gmra.mxu1 %vm505_vm4, %v2275_v58 }
 0x174   : > { %2268 = vmatmul.msk.f32.gmra.mxu2 %vm505_vm4, %v2263_v61  ;;  %2273 = vmatmul.msk.f32.gmra.mxu3 %vm505_vm4, %v2263_v61 }
 0x175   : > { %2281 = vmatmul.msk.f32.gmra.mxu0 %vm505_vm4, %v2276_v62  ;;  %2286 = vmatmul.msk.f32.gmra.mxu1 %vm505_vm4, %v2276_v62 }
 0x17c   : > { %2269 = vmatmul.msk.f32.gmra.mxu2 %vm505_vm4, %v2264_v63  ;;  %2274 = vmatmul.msk.f32.gmra.mxu3 %vm505_vm4, %v2264_v63 }
 0x17d   : > { %2282 = vmatmul.msk.f32.gmra.mxu0 %vm505_vm4, %v2277_v0  ;;  %2287 = vmatmul.msk.f32.gmra.mxu1 %vm505_vm4, %v2277_v0 }
 0x184   : > { %2294 = vmatmul.msk.f32.vlgmr.msrb.gmra.mxu2 %vm505_vm4, %v2289_v1  ;;  %2299 = vmatmul.msk.f32.vlgmr.msrb.gmra.mxu3 %vm505_vm4, %v2289_v1 }
 0x185   : > { %2283 = vmatmul.msk.f32.gmra.mxu0 %vm505_vm4, %v2278_v3  ;;  %2288 = vmatmul.msk.f32.gmra.mxu1 %vm505_vm4, %v2278_v3 }
 0x18c   : > { %2295 = vmatmul.msk.f32.gmra.mxu2 %vm505_vm4, %v2290_v4  ;;  %2300 = vmatmul.msk.f32.gmra.mxu3 %vm505_vm4, %v2290_v4  ;;  %v1411_v4 = vld [vmem:[%s3314_s7 + $0x8] sm:$0xff] }
 0x18d   : > { %2308 = vmatmul.msk.f32.vlgmr.msra.gmra.mxu0 %vm505_vm4, %v2303_v5  ;;  %2313 = vmatmul.msk.f32.vlgmr.msra.gmra.mxu1 %vm505_vm4, %v2303_v5 }
 0x18e   : > { %1421 = vperm.xlu2 %2423, %v1411_v4  }
 0x194   : > { %2296 = vmatmul.msk.f32.gmra.mxu2 %vm505_vm4, %v2291_v6  ;;  %2301 = vmatmul.msk.f32.gmra.mxu3 %vm505_vm4, %v2291_v6 }
 0x195   : > { %2309 = vmatmul.msk.f32.gmra.mxu0 %vm505_vm4, %v2304_v8  ;;  %2314 = vmatmul.msk.f32.gmra.mxu1 %vm505_vm4, %v2304_v8 }
 0x19c   : > { %2297 = vmatmul.msk.f32.gmra.mxu2 %vm505_vm4, %v2292_v13  ;;  %2302 = vmatmul.msk.f32.gmra.mxu3 %vm505_vm4, %v2292_v13 }
 0x19d   : > { %2310 = vmatmul.msk.f32.gmra.mxu0 %vm505_vm4, %v2305_v14  ;;  %2315 = vmatmul.msk.f32.gmra.mxu1 %vm505_vm4, %v2305_v14 }
 0x1a2   : > { %v1388_v2 = vpop.permute.xlu2 %1387 }
 0x1a4   : > { %2322 = vmatmul.msk.f32.vlgmr.msra.gmra.mxu2 %vm505_vm4, %v2317_v21  ;;  %2327 = vmatmul.msk.f32.vlgmr.msra.gmra.mxu3 %vm505_vm4, %v2317_v21 }
 0x1a5   : > { %2311 = vmatmul.msk.f32.gmra.mxu0 %vm505_vm4, %v2306_v23  ;;  %2316 = vmatmul.msk.f32.gmra.mxu1 %vm505_vm4, %v2306_v23 }
 0x1a7   : > { %v542_v25 = vpop.f32.mrf.mxu2  ;;  %v571_v29 = vpop.f32.mrf.mxu3 }
 0x1aa   : > { %v618_v36 = vpop.f32.mrf.mxu0  ;;  %v647_v37 = vpop.f32.mrf.mxu1 }
 0x1ab   : > { %v619_v5 = vadd.f32 %v618_v36, %v542_v25  ;;  %v648_v6 = vadd.f32 %v647_v37, %v571_v29 }
 0x1ac   : > { %2323 = vmatmul.msk.f32.gmra.mxu2 %vm505_vm4, %v2318_v31  ;;  %2328 = vmatmul.msk.f32.gmra.mxu3 %vm505_vm4, %v2318_v31 }
 0x1af   : > { %v545_v39 = vpop.f32.mrf.mxu2  ;;  %v574_v40 = vpop.f32.mrf.mxu3 }
 0x1b2   : > { %v621_v42 = vpop.f32.mrf.mxu0  ;;  %v650_v43 = vpop.f32.mrf.mxu1 }
 0x1b3   : > { %v622_v44 = vadd.f32 %v621_v42, %v545_v39  ;;  %v651_v46 = vadd.f32 %v650_v43, %v574_v40 }
 0x1b4   : > { %2324 = vmatmul.msk.f32.gmra.mxu2 %vm505_vm4, %v2319_v41  ;;  %2329 = vmatmul.msk.f32.gmra.mxu3 %vm505_vm4, %v2319_v41 }
 0x1b7   : > { %v548_v52 = vpop.f32.mrf.mxu2  ;;  %v577_v53 = vpop.f32.mrf.mxu3 }
 0x1ba   : > { %v624_v55 = vpop.f32.mrf.mxu0  ;;  %v653_v56 = vpop.f32.mrf.mxu1 }
 0x1bb   : > { %v625_v57 = vadd.f32 %v624_v55, %v548_v52  ;;  %v654_v58 = vadd.f32 %v653_v56, %v577_v53 }
 0x1bc   : > { %2325 = vmatmul.msk.f32.gmra.mxu2 %vm505_vm4, %v2320_v54  ;;  %2330 = vmatmul.msk.f32.gmra.mxu3 %vm505_vm4, %v2320_v54 }
 0x1bf   : > { %v551_v61 = vpop.f32.mrf.mxu2  ;;  %v580_v62 = vpop.f32.mrf.mxu3 }
 0x1c2   : > { %v627_v63 = vpop.f32.mrf.mxu0  ;;  %v656_v0 = vpop.f32.mrf.mxu1 }
 0x1c3   : > { %v628_v1 = vadd.f32 %v627_v63, %v551_v61  ;;  %v657_v3 = vadd.f32 %v656_v0, %v580_v62 }
 0x1c7   : > { %v713_v8 = vpop.f32.mrf.mxu2  ;;  %v742_v13 = vpop.f32.mrf.mxu3 }
 0x1c8   : > { %v754_v14 = vadd.f32 %v713_v8, %v619_v5  ;;  %v755_v15 = vadd.f32 %v742_v13, %v648_v6 }
 0x1ca   : > { %v816_v21 = vpop.f32.mrf.mxu0  ;;  %v845_v23 = vpop.f32.mrf.mxu1 }
 0x1cb   : > { %v857_v24 = vadd.f32 %v816_v21, %v754_v14  ;;  %v858_v31 = vadd.f32 %v845_v23, %v755_v15 }
 0x1cf   : > { %v716_v38 = vpop.f32.mrf.mxu2  ;;  %v745_v39 = vpop.f32.mrf.mxu3 }
 0x1d0   : > { %v756_v40 = vadd.f32 %v716_v38, %v622_v44  ;;  %v757_v41 = vadd.f32 %v745_v39, %v651_v46 }
 0x1d2   : > { %v819_v42 = vpop.f32.mrf.mxu0  ;;  %v848_v43 = vpop.f32.mrf.mxu1 }
 0x1d3   : > { %v859_v51 = vadd.f32 %v819_v42, %v756_v40  ;;  %v860_v52 = vadd.f32 %v848_v43, %v757_v41 }
 0x1d7   : > { %v719_v53 = vpop.f32.mrf.mxu2  ;;  %v748_v54 = vpop.f32.mrf.mxu3 }
 0x1d8   : > { %v758_v25 = vadd.f32 %v719_v53, %v625_v57  ;;  %v759_v29 = vadd.f32 %v748_v54, %v654_v58 }
 0x1da   : > { %v822_v36 = vpop.f32.mrf.mxu0  ;;  %v851_v37 = vpop.f32.mrf.mxu1 }
 0x1db   : > { %v861_v55 = vadd.f32 %v822_v36, %v758_v25  ;;  %v862_v56 = vadd.f32 %v851_v37, %v759_v29 }
 0x1df   : > { %v722_v61 = vpop.f32.mrf.mxu2  ;;  %v751_v62 = vpop.f32.mrf.mxu3 }
 0x1e0   : > { %v760_v63 = vadd.f32 %v722_v61, %v628_v1  ;;  %v761_v0 = vadd.f32 %v751_v62, %v657_v3 }
 0x1e2   : > { %v825_v6 = vpop.f32.mrf.mxu0  ;;  %v854_v8 = vpop.f32.mrf.mxu1 }
 0x1e3   : > { %v863_v50 = vadd.f32 %v825_v6, %v760_v63  ;;  %v864_v27 = vadd.f32 %v854_v8, %v761_v0 }
 0x1e7   : > { %v905_v4 = vpop.f32.mrf.mxu2  ;;  %v934_v5 = vpop.f32.mrf.mxu3 }
 0x1e8   : > { %v946_v44 = vadd.f32 %v905_v4, %v857_v24  ;;  %v947_v46 = vadd.f32 %v934_v5, %v858_v31 }
 0x1ea   : > { %v1008_v57 = vpop.f32.mrf.mxu0  ;;  %v1037_v58 = vpop.f32.mrf.mxu1 }
 0x1eb   : > { %v1049_v35 = vadd.f32 %v1008_v57, %v946_v44  ;;  %v1050_v10 = vadd.f32 %v1037_v58, %v947_v46 }
 0x1ef   : > { %v908_v13 = vpop.f32.mrf.mxu2  ;;  %v937_v14 = vpop.f32.mrf.mxu3 }
 0x1f0   : > { %v948_v15 = vadd.f32 %v908_v13, %v859_v51  ;;  %v949_v21 = vadd.f32 %v937_v14, %v860_v52 }
 0x1f2   : > { %v1011_v41 = vpop.f32.mrf.mxu0  ;;  %v1040_v42 = vpop.f32.mrf.mxu1 }
 0x1f3   : > { %v1051_v60 = vadd.f32 %v1011_v41, %v948_v15  ;;  %v1052_v48 = vadd.f32 %v1040_v42, %v949_v21  ;;  %v1378_v41 = vpop.permute.xlu1 %1377 }
 0x1f7   : > { %v911_v23 = vpop.f32.mrf.mxu2  ;;  %v940_v38 = vpop.f32.mrf.mxu3 }
 0x1f8   : > { %v950_v39 = vadd.f32 %v911_v23, %v861_v55  ;;  %v951_v40 = vadd.f32 %v940_v38, %v862_v56 }
 0x1fa   : > { %v1014_v24 = vpop.f32.mrf.mxu0  ;;  %v1043_v31 = vpop.f32.mrf.mxu1 }
 0x1fb   : > { %v1053_v59 = vadd.f32 %v1014_v24, %v950_v39  ;;  %v1054_v12 = vadd.f32 %v1043_v31, %v951_v40 }
 0x1ff   : > { %v914_v1 = vpop.f32.mrf.mxu2  ;;  %v943_v3 = vpop.f32.mrf.mxu3 }
 0x200   : > { %v952_v11 = vadd.f32 %v914_v1, %v863_v50  ;;  %v953_v28 = vadd.f32 %v943_v3, %v864_v27 }
 0x202   : > { %v1017_v29 = vpop.f32.mrf.mxu0  ;;  %v1046_v36 = vpop.f32.mrf.mxu1 }
 0x203   : > { %v1055_v49 = vadd.f32 %v1017_v29, %v952_v11  ;;  %v1056_v33 = vadd.f32 %v1046_v36, %v953_v28  ;;  %v1407_v29 = vld [vmem:[%s3313_s6 + $0x8] sm:$0xff]  ;;  %v1408_v36 = vld [vmem:[%s3313_s6 + $0x10] sm:$0xff] }
 0x207   : > { %v1111_v43 = vpop.f32.mrf.mxu2  ;;  %v1140_v53 = vpop.f32.mrf.mxu3 }
 0x208   : > { %v1152_v0 = vadd.f32 %v1111_v43, %v1049_v35  ;;  %v1153_v50 = vadd.f32 %v1140_v53, %v1050_v10  ;;  %v1383_v35 = vpop.permute.xlu0 %1382 }
 0x20a   : > { %v1214_v37 = vpop.f32.mrf.mxu0  ;;  %v1243_v61 = vpop.f32.mrf.mxu1 }
 0x20b   : > { %v1256_v44 = vadd.f32 %v1243_v61, %v1153_v50 }
 0x20f   : > { %v1114_v54 = vpop.f32.mrf.mxu2  ;;  %v1143_v25 = vpop.f32.mrf.mxu3 }
 0x210   : > { %v1154_v9 = vadd.f32 %v1114_v54, %v1051_v60  ;;  %v1155_v45 = vadd.f32 %v1143_v25, %v1052_v48 }
 0x212   : > { %v1217_v55 = vpop.f32.mrf.mxu0  ;;  %v1246_v56 = vpop.f32.mrf.mxu1 }
 0x213   : > { %v1257_v21 = vadd.f32 %v1217_v55, %v1154_v9  ;;  %v1258_v39 = vadd.f32 %v1246_v56, %v1155_v45  ;;  %v1432_v56 = vpop.permute.xlu0 %1431 }
 0x217   : > { %v1117_v51 = vpop.f32.mrf.mxu2  ;;  %v1146_v52 = vpop.f32.mrf.mxu3 }
 0x218   : > { %v1156_v34 = vadd.f32 %v1117_v51, %v1053_v59  ;;  %v1157_v19 = vadd.f32 %v1146_v52, %v1054_v12  ;;  %v1255_v12 = vadd.f32 %v1214_v37, %v1152_v0  ;;  %v1409_v51 = vld [vmem:[%s3313_s6 + $0x18] sm:$0xff] }
 0x21a   : > { %v1220_v38 = vpop.f32.mrf.mxu0  ;;  %v1249_v47 = vpop.f32.mrf.mxu1 }
 0x21b   : > { %v1259_v8 = vadd.f32 %v1220_v38, %v1156_v34  ;;  %v1260_v15 = vadd.f32 %v1249_v47, %v1157_v19 }
 0x21f   : > { %v1120_v62 = vpop.f32.mrf.mxu2  ;;  %v1149_v4 = vpop.f32.mrf.mxu3 }
 0x220   : > { %v1158_v7 = vadd.f32 %v1120_v62, %v1055_v49  ;;  %v1159_v63 = vadd.f32 %v1149_v4, %v1056_v33 }
 0x222   : > { %v1223_v27 = vpop.f32.mrf.mxu0  ;;  %v1252_v6 = vpop.f32.mrf.mxu1 }
 0x223   : > { %v1261_v40 = vadd.f32 %v1223_v27, %v1158_v7  ;;  %v1262_v11 = vadd.f32 %v1252_v6, %v1159_v63  ;;  %v1373_v7 = vpop.permute.xlu2 %1372 }
 0x227   : > { %v1317_v5 = vpop.f32.mrf.mxu2  ;;  %v1346_v13 = vpop.f32.mrf.mxu3 }
 0x228   : > { %v1358_v10 = vadd.f32 %v1317_v5, %v1255_v12  ;;  %v1359_v58 = vadd.f32 %v1346_v13, %v1256_v44  ;;  %v1427_v5 = vpop.permute.xlu1 %1426 }
 0x22a   : > { %v1390_v1 = vadd.f32 %v1373_v7, %v1358_v10  ;;  %v1391_v3 = vadd.f32 %v1373_v7, %v1359_v58  ;;  %v2356_v10 = vld [vmem:[%s3315_s8 + $0x18] sm:$0xf]  ;;  %v2359_v58 = vld [vmem:[%s3315_s8 + $0x1c] sm:$0xf] }
 0x22b   : > { %v1422_v50 = vpop.permute.xlu2 %1421 }
 0x22c   : > { %v1398_v54 = vmax.f32 %v1390_v1, 0.0  ;;  %v1399_v25 = vmax.f32 %v1391_v3, 0.0 }
 0x22f   : > { %v1320_v14 = vpop.f32.mrf.mxu2  ;;  %v1349_v23 = vpop.f32.mrf.mxu3 }
 0x230   : > { %v1360_v48 = vadd.f32 %v1320_v14, %v1257_v21  ;;  %v1361_v57 = vadd.f32 %v1349_v23, %v1258_v39  ;;  %v1417_v21 = vpop.permute.xlu0 %1416 }
 0x232   : > { %v1392_v47 = vadd.f32 %v1378_v41, %v1360_v48  ;;  %v2341_v48 = vld [vmem:[%s3315_s8 + $0x4] sm:$0xf] }
 0x234   : > { %v1400_v24 = vmax.f32 %v1392_v47, 0.0 }
 0x237   : > { %v1323_v32 = vpop.f32.mrf.mxu2  ;;  %v1352_v18 = vpop.f32.mrf.mxu3 }
 0x238   : > { %v1362_v28 = vadd.f32 %v1323_v32, %v1259_v8  ;;  %v1363_v59 = vadd.f32 %v1352_v18, %v1260_v15  ;;  %v1393_v32 = vadd.f32 %v1378_v41, %v1361_v57  ;;  %v2344_v57 = vld [vmem:[%s3315_s8 + $0x8] sm:$0xf]  ;;  %v2362_v41 = vld [vmem:[%s3315_s8 + $0x20] sm:$0xf] }
 0x23a   : > { %v1394_v34 = vadd.f32 %v1383_v35, %v1362_v28  ;;  %v1395_v19 = vadd.f32 %v1383_v35, %v1363_v59  ;;  %v1401_v31 = vmax.f32 %v1393_v32, 0.0  ;;  %v2353_v35 = vld [vmem:[%s3315_s8 + $0x14] sm:$0xf] }
 0x23c   : > { %v1402_v43 = vmax.f32 %v1394_v34, 0.0  ;;  %v1403_v53 = vmax.f32 %v1395_v19, 0.0 }
 0x23f   : > { %v1326_v46 = vpop.f32.mrf.mxu2  ;;  %v1355_v60 = vpop.f32.mrf.mxu3 }
 0x240   : > { %v1364_v49 = vadd.f32 %v1326_v46, %v1261_v40  ;;  %v1365_v33 = vadd.f32 %v1355_v60, %v1262_v11  ;;  %v1514_v60 = vld [vmem:[%s3315_s8] sm:$0xf] }
 0x242   : > { %v1396_v9 = vadd.f32 %v1388_v2, %v1364_v49  ;;  %v1397_v45 = vadd.f32 %v1388_v2, %v1365_v33  ;;  %v1406_v2 = vld [vmem:[%s3313_s6] sm:$0xff]  ;;  %v2347_v49 = vld [vmem:[%s3315_s8 + $0xc] sm:$0xf]  ;;  %v2350_v33 = vld [vmem:[%s3315_s8 + $0x10] sm:$0xf] }
 0x244   : > { %v1404_v18 = vmax.f32 %v1396_v9, 0.0  ;;  %v1405_v42 = vmax.f32 %v1397_v45, 0.0 }
 0x246   : > { %1459 = vmatpush.msrb.mxu0 %v1404_v18  ;;  %1488 = vmatpush.msrb.mxu1 %v1405_v42 }
 0x248   : > { %1460 = vmatpush.msrb.mxu0 %v1402_v43  ;;  %1489 = vmatpush.msrb.mxu1 %v1403_v53 }
 0x24a   : > { %1461 = vmatpush.msrb.mxu0 %v1400_v24  ;;  %1490 = vmatpush.msrb.mxu1 %v1401_v31 }
 0x24c   : > { %1462 = vmatpush.msrb.mxu0 %v1398_v54  ;;  %1491 = vmatpush.msrb.mxu1 %v1399_v25 }
 0x24d   : > { %2331 = vmatmul.msk.f32.vlgmr.msrb.gmra.mxu0 %vm1434_vm12, %v1406_v2  ;;  %2335 = vmatmul.msk.f32.vlgmr.msrb.gmra.mxu1 %vm1434_vm12, %v1406_v2 }
 0x255   : > { %2332 = vmatmul.msk.f32.gmra.mxu0 %vm1434_vm12, %v1407_v29  ;;  %2336 = vmatmul.msk.f32.gmra.mxu1 %vm1434_vm12, %v1407_v29 }
 0x25d   : > { %2333 = vmatmul.msk.f32.gmra.mxu0 %vm1434_vm12, %v1408_v36  ;;  %2337 = vmatmul.msk.f32.gmra.mxu1 %vm1434_vm12, %v1408_v36 }
 0x265   : > { %2334 = vmatmul.msk.f32.gmra.mxu0 %vm1434_vm12, %v1409_v51  ;;  %2338 = vmatmul.msk.f32.gmra.mxu1 %vm1434_vm12, %v1409_v51 }
 0x2ca   : > { %v1464_v52 = vpop.f32.mrf.mxu0  ;;  %v1493_v37 = vpop.f32.mrf.mxu1 }
 0x2cb   : > { %v1465_v39 = vadd.f32 %v1464_v52, %v1417_v21  ;;  %v1494_v40 = vadd.f32 %v1493_v37, %v1417_v21 }
 0x2cd   : > { %v3054_v44 = vmax.f32 %v1465_v39, 0.0  ;;  %v3056_v46 = vmax.f32 %v1494_v40, 0.0  ;;  %v1513_v40 = vld [vmem:[%s3316_s9] sm:$0xff] }
 0x2d2   : > { %v1467_v61 = vpop.f32.mrf.mxu0  ;;  %v1496_v62 = vpop.f32.mrf.mxu1 }
 0x2d3   : > { %v1468_v27 = vadd.f32 %v1467_v61, %v1422_v50  ;;  %v1497_v6 = vadd.f32 %v1496_v62, %v1422_v50  ;;  %v3386_v50 = vperm.slane %v2678_v17, 1 }
 0x2d5   : > { %v3046_v59 = vmax.f32 %v1468_v27, 0.0  ;;  %v3048_v12 = vmax.f32 %v1497_v6, 0.0  ;;  %v3387_v6 = vperm.slane %v2710_v30, 0 }
 0x2da   : > { %v1470_v4 = vpop.f32.mrf.mxu0  ;;  %v1499_v55 = vpop.f32.mrf.mxu1 }
 0x2db   : > { %v1471_v23 = vadd.f32 %v1470_v4, %v1427_v5  ;;  %v1500_v38 = vadd.f32 %v1499_v55, %v1427_v5  ;;  %v3385_v55 = vperm.slane %v2710_v30, 1 }
 0x2dd   : > { %v3038_v11 = vmax.f32 %v1471_v23, 0.0  ;;  %v3040_v28 = vmax.f32 %v1500_v38, 0.0 }
 0x2e2   : > { %v1473_v13 = vpop.f32.mrf.mxu0  ;;  %v1502_v14 = vpop.f32.mrf.mxu1 }
 0x2e3   : > { %v1474_v63 = vadd.f32 %v1473_v13, %v1432_v56  ;;  %v1503_v0 = vadd.f32 %v1502_v14, %v1432_v56 }
 0x2e5   : > { %v3034_v8 = vmax.f32 %v1474_v63, 0.0  ;;  %v3036_v15 = vmax.f32 %v1503_v0, 0.0 }
 0x2e7   : > { %1530 = vmatpush.msrb.mxu2 %v3034_v8  ;;  %1550 = vmatpush.msrb.mxu3 %v3036_v15 }
 0x2e8   : > { %1589 = vmatpush.msra.mxu0 %v3034_v8  ;;  %1609 = vmatpush.msra.mxu1 %v3036_v15 }
 0x2e9   : > { %1531 = vmatpush.msrb.mxu2 %v3038_v11  ;;  %1551 = vmatpush.msrb.mxu3 %v3040_v28 }
 0x2ea   : > { %1590 = vmatpush.msra.mxu0 %v3038_v11  ;;  %1610 = vmatpush.msra.mxu1 %v3040_v28 }
 0x2eb   : > { %1532 = vmatpush.msrb.mxu2 %v3046_v59  ;;  %1552 = vmatpush.msrb.mxu3 %v3048_v12 }
 0x2ec   : > { %1591 = vmatpush.msra.mxu0 %v3046_v59  ;;  %1611 = vmatpush.msra.mxu1 %v3048_v12 }
 0x2ed   : > { %1533 = vmatpush.msrb.mxu2 %v3054_v44  ;;  %1553 = vmatpush.msrb.mxu3 %v3056_v46 }
 0x2ee   : > { %1592 = vmatpush.msra.mxu0 %v3054_v44  ;;  %1612 = vmatpush.msra.mxu1 %v3056_v46 }
 0x2ef   : > { %2340 = vmatmul.msk.f32.vlgmr.msrb.gmra.mxu3 %vm1434_vm12, %v1514_v60  ;;  %2343 = vmatmul.msk.f32.vlgmr.msra.gmra.mxu1 %vm1434_vm12, %v2341_v48 }
 0x2f0   : > { %1648 = vmatpush.msra.mxu2 %v3034_v8  ;;  %1668 = vmatpush.msra.mxu3 %v3036_v15 }
 0x2f1   : > { %1707 = vmatpush.msrb.mxu0 %v3034_v8  ;;  %1727 = vmatpush.msrb.mxu1 %v3036_v15 }
 0x2f2   : > { %2339 = vmatmul.msk.f32.vlgmr.msrb.gmra.mxu2 %vm1434_vm12, %v1514_v60  ;;  %1669 = vmatpush.msra.mxu3 %v3040_v28 }
 0x2f3   : > { %1649 = vmatpush.msra.mxu2 %v3038_v11  ;;  %1708 = vmatpush.msrb.mxu0 %v3038_v11 }
 0x2f4   : > { %1728 = vmatpush.msrb.mxu1 %v3040_v28  ;;  %1670 = vmatpush.msra.mxu3 %v3048_v12 }
 0x2f5   : > { %1650 = vmatpush.msra.mxu2 %v3046_v59  ;;  %1709 = vmatpush.msrb.mxu0 %v3046_v59 }
 0x2f6   : > { %1729 = vmatpush.msrb.mxu1 %v3048_v12  ;;  %2342 = vmatmul.msk.f32.vlgmr.msra.gmra.mxu0 %vm1434_vm12, %v2341_v48 }
 0x2f7   : > { %1651 = vmatpush.msra.mxu2 %v3054_v44  ;;  %1671 = vmatpush.msra.mxu3 %v3056_v46 }
 0x2f8   : > { %1710 = vmatpush.msrb.mxu0 %v3054_v44  ;;  %1730 = vmatpush.msrb.mxu1 %v3056_v46 }
 0x2f9   : > { %1766 = vmatpush.msrb.mxu2 %v3034_v8  ;;  %1786 = vmatpush.msrb.mxu3 %v3036_v15 }
 0x2fa   : > { %1817 = vmatpush.msra.mxu0 %v3034_v8  ;;  %1837 = vmatpush.msra.mxu1 %v3036_v15 }
 0x2fb   : > { %2346 = vmatmul.msk.f32.vlgmr.msra.gmra.mxu3 %vm1434_vm12, %v2344_v57  ;;  %1767 = vmatpush.msrb.mxu2 %v3038_v11 }
 0x2fc   : > { %1787 = vmatpush.msrb.mxu3 %v3040_v28  ;;  %1818 = vmatpush.msra.mxu0 %v3038_v11 }
 0x2fd   : > { %1838 = vmatpush.msra.mxu1 %v3040_v28  ;;  %2345 = vmatmul.msk.f32.vlgmr.msra.gmra.mxu2 %vm1434_vm12, %v2344_v57 }
 0x2fe   : > { %1768 = vmatpush.msrb.mxu2 %v3046_v59  ;;  %1788 = vmatpush.msrb.mxu3 %v3048_v12 }
 0x2ff   : > { %1819 = vmatpush.msra.mxu0 %v3046_v59  ;;  %1839 = vmatpush.msra.mxu1 %v3048_v12 }
 0x300   : > { %1769 = vmatpush.msrb.mxu2 %v3054_v44  ;;  %1789 = vmatpush.msrb.mxu3 %v3056_v46 }
 0x301   : > { %1820 = vmatpush.msra.mxu0 %v3054_v44  ;;  %1840 = vmatpush.msra.mxu1 %v3056_v46 }
 0x302   : > { %2348 = vmatmul.msk.f32.vlgmr.msrb.gmra.mxu0 %vm1434_vm12, %v2347_v49  ;;  %2349 = vmatmul.msk.f32.vlgmr.msrb.gmra.mxu1 %vm1434_vm12, %v2347_v49  ;;  %v3390_v49 = vperm.slane %v2678_v17, 0 }
 0x303   : > { %1876 = vmatpush.msra.mxu2 %v3034_v8  ;;  %1896 = vmatpush.msra.mxu3 %v3036_v15 }
 0x304   : > { %1935 = vmatpush.msrb.mxu0 %v3034_v8  ;;  %1955 = vmatpush.msrb.mxu1 %v3036_v15 }
 0x305   : > { %2352 = vmatmul.msk.f32.vlgmr.msrb.gmra.mxu3 %vm1434_vm12, %v2350_v33  ;;  %1877 = vmatpush.msra.mxu2 %v3038_v11 }
 0x306   : > { %1897 = vmatpush.msra.mxu3 %v3040_v28  ;;  %1936 = vmatpush.msrb.mxu0 %v3038_v11 }
 0x307   : > { %1956 = vmatpush.msrb.mxu1 %v3040_v28  ;;  %2351 = vmatmul.msk.f32.vlgmr.msrb.gmra.mxu2 %vm1434_vm12, %v2350_v33 }
 0x308   : > { %1878 = vmatpush.msra.mxu2 %v3046_v59  ;;  %1898 = vmatpush.msra.mxu3 %v3048_v12 }
 0x309   : > { %1937 = vmatpush.msrb.mxu0 %v3046_v59  ;;  %1957 = vmatpush.msrb.mxu1 %v3048_v12 }
 0x30a   : > { %1879 = vmatpush.msra.mxu2 %v3054_v44  ;;  %1899 = vmatpush.msra.mxu3 %v3056_v46 }
 0x30b   : > { %1938 = vmatpush.msrb.mxu0 %v3054_v44  ;;  %1958 = vmatpush.msrb.mxu1 %v3056_v46 }
 0x30c   : > { %1994 = vmatpush.msrb.mxu2 %v3034_v8  ;;  %2014 = vmatpush.msrb.mxu3 %v3036_v15  ;;  %v3388_v15 = vperm.slane %v2699_v26, 1 }
 0x30d   : > { %2354 = vmatmul.msk.f32.vlgmr.msra.gmra.mxu0 %vm1434_vm12, %v2353_v35  ;;  %2355 = vmatmul.msk.f32.vlgmr.msra.gmra.mxu1 %vm1434_vm12, %v2353_v35  ;;  %v3391_v35 = vperm.slane %v2699_v26, 0 }
 0x30e   : > { %1995 = vmatpush.msrb.mxu2 %v3038_v11  ;;  %2015 = vmatpush.msrb.mxu3 %v3040_v28 }
 0x30f   : > { %2358 = vmatmul.msk.f32.vlgmr.msra.gmra.mxu3 %vm1434_vm12, %v2356_v10  ;;  %2357 = vmatmul.msk.f32.vlgmr.msra.gmra.mxu2 %vm1434_vm12, %v2356_v10 }
 0x310   : > { %1996 = vmatpush.msrb.mxu2 %v3046_v59  ;;  %2016 = vmatpush.msrb.mxu3 %v3048_v12 }
 0x312   : > { %1997 = vmatpush.msrb.mxu2 %v3054_v44  ;;  %2017 = vmatpush.msrb.mxu3 %v3056_v46  ;;  %v3389_v44 = vperm.slane %v2691_v22, 1 }
 0x315   : > { %2360 = vmatmul.msk.f32.vlgmr.msrb.gmra.mxu0 %vm1434_vm12, %v2359_v58  ;;  %2361 = vmatmul.msk.f32.vlgmr.msrb.gmra.mxu1 %vm1434_vm12, %v2359_v58 }
 0x317   : > { %2363 = vmatmul.msk.f32.vlgmr.msrb.gmra.mxu2 %vm1434_vm12, %v2362_v41  ;;  %2364 = vmatmul.msk.f32.vlgmr.msrb.gmra.mxu3 %vm1434_vm12, %v2362_v41 }
 0x36c   : > { %v1614_v34 = vpop.f32.mrf.mxu1 }
 0x36d   : > { %1619 = vrot.lane.b32.xlu1 %v1614_v34, %s2497_s29 }
 0x372   : > { %v1555_v19 = vpop.f32.mrf.mxu3 }
 0x373   : > { %v1594_v9 = vpop.f32.mrf.mxu0  ;;  %1560 = vrot.lane.b32.xlu2 %v1555_v19, %s3378_s25 }
 0x374   : > { %1617 = vrot.lane.b32.xlu0 %v1594_v9, %s2497_s29  ;;  %s3381_s29 = smov 127  }
 0x375   : > { %v1535_v45 = vpop.f32.mrf.mxu2 }
 0x376   : > { %1558 = vrot.lane.b32.xlu1 %v1535_v45, %s3378_s25  ;;  %s378_s25 = sand.u32 1, %s2485_s18  }
 0x377   : > { %s2095_s0 = scalar_lea.sflag [#allocation3], %s378_s25 }
 0x37e   : > { %v1673_v7 = vpop.f32.mrf.mxu3 }
 0x37f   : > { %v1712_v47 = vpop.f32.mrf.mxu0  ;;  %1678 = vrot.lane.b32.xlu0 %v1673_v7, %s3379_s30  ;;  %v1732_v32 = vpop.f32.mrf.mxu1 }
 0x380   : > { %v1653_v18 = vpop.f32.mrf.mxu2  ;;  %1735 = vrot.lane.b32.xlu1 %v1712_v47, %s3380_s16  ;;  %1737 = vrot.lane.b32.xlu2 %v1732_v32, %s3380_s16  ;;  %v3392_v47 = vperm.slane %v2691_v22, 0  ;;  %v3393_v32 = vperm.slane %v2686_v20, 1 }
 0x388   : > { %v1791_v42 = vpop.f32.mrf.mxu3  ;;  %1676 = vrot.lane.b32.xlu2 %v1653_v18, %s3379_s30  ;;  %s2199_s30 = sshll.u32 %s378_s25, 3 }
 0x389   : > { %v1796_v1 = vrot.slane %v1791_v42, 4  ;;  %s380_s16 = scalar_lea.vmem [#allocation2], %s2199_s30 }
 0x38a   : > { %v1822_v3 = vpop.f32.mrf.mxu0  ;;  %v1771_v43 = vpop.f32.mrf.mxu2  ;;  %s2111_s14 = sshll.u32 %s380_s16, 4  ;;  %s2112_s14 = int_to_ptr.vmem [resolvable:$true] %s2111_s14 }
 0x38b   : > { %1845 = vrot.lane.b32.xlu0 %v1822_v3, %s3381_s29  ;;  %v3177_v53 = vsel %vm410_vm0, %v1771_v43, %v1796_v1  ;;  %v1842_v24 = vpop.f32.mrf.mxu1 }
 0x38c   : > { %1847 = vrot.lane.b32.xlu1 %v1842_v24, %s3381_s29  ;;  %s2371_s29 = sshll.u32 %s2585_s21, 3  ;;  %s2451_s21 = scalar_lea.hbm %s3317_s10, 16 }
 0x392   : > { %v1901_v31 = vpop.f32.mrf.mxu3  ;;  %v1881_v54 = vpop.f32.mrf.mxu2 }
 0x393   : > { %1906 = vrot.lane.b32.xlu0 %v1901_v31, %s3382_s22  ;;  %v1940_v25 = vpop.f32.mrf.mxu0  ;;  %1904 = vrot.lane.b32.xlu2 %v1881_v54, %s3382_s22  ;;  %v1960_v2 = vpop.f32.mrf.mxu1 }
 0x394   : > { %1963 = vrot.lane.b32.xlu1 %v1940_v25, %s3383_s13 }
 0x39a   : > { %v1999_v29 = vpop.f32.mrf.mxu2  ;;  %v2019_v36 = vpop.f32.mrf.mxu3 }
 0x39b   : > { %2022 = vrot.lane.b32.xlu0 %v1999_v29, %s3384_s24  ;;  %1965 = vrot.lane.b32.xlu2 %v1960_v2, %s3383_s13  ;;  %v3394_v2 = vld [vmem:[#allocation8_spill] sm:$0xff] }
 0x39c   : > { %2024 = vrot.lane.b32.xlu1 %v2019_v36, %s3384_s24  ;;  %v3395_v29 = vperm.slane %v3394_v2, 1  ;;  %s2109_s24 = scalar_lea.hbm %s3317_s10, %s2371_s29 }
 0x39d   : > { %s2113_s15 = sshll.u32 %s2109_s24, 4  ;;  %s2114_s15 = int_to_ptr.hbm [resolvable:$true] %s2113_s15 }
 0x39e   : > { %s2445_s1 = sshra.s32 %s2114_s15, 4  ;;  %s2446_s1 = int_to_ptr.hbm [resolvable:$true] %s2445_s1 }
 0x39f   : > { %s2447_s2 = scalar_lea.hbm %s2446_s1, 8  ;;  %p2452_p0 = scmp.lt.s32.totalorder %s2446_s1, %s3317_s10 }
 0x3a0   : > { %p2448_p11 = scmp.ne.s32.totalorder %s2446_s1, %s2447_s2  ;;  %p2453_p1 = scmp.lt.s32.totalorder %s2451_s21, %s2447_s2 }
 0x3a2   : > { %p2449_p12 = pnand %p2448_p11, %p2602_p5  ;;  %p2454_p2 = por %p2453_p1, %p2452_p0 }
 0x3a4   : > { %p2450_p13 = pneg %p2449_p12 }
 0x3a6   : > { %p2455_p3 = pnand %p2454_p2, %p2450_p13 }
 0x3cd   : > { %v1561_v51 = vpop.permute.xlu2 %1560 }
 0x3da   : > { %v1738_v37 = vpop.permute.xlu2 %1737 }
 0x3df   : > { %v1620_v52 = vpop.permute.xlu1 %1619 }
 0x3e2   : > { %v1677_v13 = vpop.permute.xlu2 %1676 }
 0x3e6   : > { %v1618_v61 = vpop.permute.xlu0 %1617 }
 0x3e7   : > { %v1621_v23 = vsel %vm495_vm2, %v1618_v61, %v1620_v52  ;;  %v1622_v28 = vsel %vm495_vm2, %v1620_v52, %v1618_v61  ;;  %v3396_v52 = vperm.slane %v2686_v20, 0  ;;  %v3397_v61 = vld [vmem:[#allocation7_spill] sm:$0xff] }
 0x3e8   : > { %v1559_v62 = vpop.permute.xlu1 %1558  ;;  %v1624_v27 = vmul.f32 %v1621_v23, %v3386_v50  ;;  %v1623_v33 = vmul.f32 %v1622_v28, %v3390_v49  ;;  %v3400_v50 = vperm.slane %v3397_v61, 0 }
 0x3e9   : > { %v1562_v4 = vsel %vm476_vm6, %v1559_v62, %v1561_v51  ;;  %v1563_v38 = vsel %vm476_vm6, %v1561_v51, %v1559_v62  ;;  %v3398_v62 = vperm.slane %v3397_v61, 1 }
 0x3ea   : > { %v1565_v56 = vmul.f32 %v1562_v4, %v3385_v55  ;;  %v1564_v8 = vmul.f32 %v1563_v38, %v3387_v6  ;;  %v1627_v30 = vrot.slane %v1624_v27, 4 }
 0x3ec   : > { %v1568_v0 = vrot.slane %v1565_v56, 4  ;;  %v1628_v19 = vsel %vm410_vm0, %v1623_v33, %v1627_v30 }
 0x3ed   : > { %v1905_v60 = vpop.permute.xlu2 %1904 }
 0x3ee   : > { %v1569_v11 = vsel %vm410_vm0, %v1564_v8, %v1568_v0 }
 0x3ef   : > { %v1571_v48 = vadd.f32 %v1569_v11, %v1513_v40 }
 0x3f1   : > { %v1679_v5 = vpop.permute.xlu0 %1678  ;;  %v1630_v7 = vadd.f32 %v1628_v19, %v1571_v48 }
 0x3f2   : > { %v1736_v14 = vpop.permute.xlu1 %1735  ;;  %v1680_v63 = vsel %vm668_vm5, %v1677_v13, %v1679_v5  ;;  %v1681_v59 = vsel %vm668_vm5, %v1679_v5, %v1677_v13  ;;  %v3399_v5 = vperm.slane %v3394_v2, 0 }
 0x3f3   : > { %v1683_v21 = vmul.f32 %v1680_v63, %v3388_v15  ;;  %v1739_v39 = vsel %vm771_vm7, %v1736_v14, %v1738_v37  ;;  %v1682_v10 = vmul.f32 %v1681_v59, %v3391_v35  ;;  %v1740_v41 = vsel %vm771_vm7, %v1738_v37, %v1736_v14 }
 0x3f4   : > { %v1742_v46 = vmul.f32 %v1739_v39, %v3389_v44  ;;  %v1741_v17 = vmul.f32 %v1740_v41, %v3392_v47  ;;  %v3401_v39 = vld [vmem:[#allocation9_spill] sm:$0xff] }
 0x3f5   : > { %v1686_v12 = vrot.slane %v1683_v21, 4  ;;  %v1966_v1 = vpop.permute.xlu2 %1965  ;;  %v3402_v40 = vperm.slane %v3401_v39, 1  ;;  %v3403_v28 = vperm.slane %v3401_v39, 0  ;;  %v3404_v47 = vld [vmem:[#allocation5_spill] sm:$0xff] }
 0x3f6   : > { %v1745_v45 = vrot.slane %v1742_v46, 4 }
 0x3f7   : > { %v1687_v9 = vsel %vm410_vm0, %v1682_v10, %v1686_v12 }
 0x3f8   : > { %v1689_v18 = vadd.f32 %v1687_v9, %v1630_v7  ;;  %v1746_v42 = vsel %vm410_vm0, %v1741_v17, %v1745_v45 }
 0x3fa   : > { %v1748_v25 = vadd.f32 %v1746_v42, %v1689_v18 }
 0x3fc   : > { %v1799_v14 = vadd.f32 %v3177_v53, %v1748_v25 }
 0x3fd   : > { %v1846_v57 = vpop.permute.xlu0 %1845 }
 0x3fe   : > { %v1848_v58 = vpop.permute.xlu1 %1847 }
 0x3ff   : > { %v1850_v34 = vsel %vm963_vm8, %v1848_v58, %v1846_v57  ;;  %v1849_v3 = vsel %vm963_vm8, %v1846_v57, %v1848_v58 }
 0x400   : > { %v1852_v26 = vmul.f32 %v1850_v34, %v3393_v32  ;;  %v1851_v37 = vmul.f32 %v1849_v3, %v3396_v52  ;;  %v3405_v32 = vld [vmem:[#allocation6_spill] sm:$0xff] }
 0x402   : > { %v1855_v24 = vrot.slane %v1852_v26, 4 }
 0x404   : > { %v1856_v56 = vsel %vm410_vm0, %v1851_v37, %v1855_v24 }
 0x405   : > { %v1907_v43 = vpop.permute.xlu0 %1906  ;;  %v1858_v0 = vadd.f32 %v1856_v56, %v1799_v14 }
 0x406   : > { %v1909_v31 = vsel %vm1066_vm9, %v1907_v43, %v1905_v60  ;;  %v1964_v54 = vpop.permute.xlu1 %1963  ;;  %v1908_v22 = vsel %vm1066_vm9, %v1905_v60, %v1907_v43 }
 0x407   : > { %v1911_v36 = vmul.f32 %v1909_v31, %v3395_v29  ;;  %v1968_v51 = vsel %vm1169_vm10, %v1966_v1, %v1964_v54  ;;  %v1910_v13 = vmul.f32 %v1908_v22, %v3399_v5  ;;  %v1967_v23 = vsel %vm1169_vm10, %v1964_v54, %v1966_v1 }
 0x408   : > { %v1970_v4 = vmul.f32 %v1968_v51, %v3398_v62  ;;  %v1969_v27 = vmul.f32 %v1967_v23, %v3400_v50 }
 0x409   : > { %v1914_v55 = vrot.slane %v1911_v36, 4 }
 0x40a   : > { %v1973_v63 = vrot.slane %v1970_v4, 4 }
 0x40b   : > { %v1915_v38 = vsel %vm410_vm0, %v1910_v13, %v1914_v55 }
 0x40c   : > { %v1917_v8 = vadd.f32 %v1915_v38, %v1858_v0  ;;  %v1974_v53 = vsel %vm410_vm0, %v1969_v27, %v1973_v63 }
 0x40d   : > { %v2023_v20 = vpop.permute.xlu0 %2022 }
 0x40e   : > { %v2025_v6 = vpop.permute.xlu1 %2024  ;;  %v1976_v12 = vadd.f32 %v1974_v53, %v1917_v8 }
 0x40f   : > { %v2026_v15 = vsel %vm1272_vm11, %v2023_v20, %v2025_v6  ;;  %v2027_v21 = vsel %vm1272_vm11, %v2025_v6, %v2023_v20 }
 0x410   : > { %v2029_v11 = vmul.f32 %v2027_v21, %v3402_v40  ;;  %v2028_v59 = vmul.f32 %v2026_v15, %v3403_v28 }
 0x412   : > { %v2032_v30 = vrot.slane %v2029_v11, 4 }
 0x414   : > { %v2033_v44 = vsel %vm410_vm0, %v2028_v59, %v2032_v30 }
 0x415   : > { %v2035_v46 = vadd.f32 %v2033_v44, %v1976_v12 }
 0x417   : > { %v2037_v60 = vand.u32 2147483647, %v2035_v46  ;;  %2048 = vst [vmem:[#allocation1] ss:$2 sm:$0xff] %v2035_v46  ;;  %v2036_v35 = vmin.f32 %v2035_v46, 0.0 }
 0x419   : > { %v2038_v48 = vsub.f32 0.0, %v2037_v60 }
 0x41b   : > { %v2039_v57 = vmul.f32 1.442695, %v2038_v48 }
 0x41d   : > { %2425 = vpow2.f32 %v2039_v57 }
 0x41e   : > { %v2049_v19 = vld.sshfl [vmem:[#allocation1] sm:$0xff pattern:$0x75316420]  ;;  %v2050_v9 = vld.sshfl [vmem:[#allocation1 + $0x8] sm:$0xff pattern:$0x75316420] }
 0x41f   : > { %v2053_v17 = vadd.f32 %v2049_v19, %v3404_v47  ;;  %v2054_v26 = vadd.f32 %v2050_v9, %v3405_v32 }
 0x423   : > { %v2426_v16 = vpop.eup %2425 }
 0x424   : > { %v2041_v49 = vadd.f32 1.0, %v2426_v16 }
 0x426   : > { %2427 = vlog2.f32 %v2041_v49 }
 0x42c   : > { %v2428_v33 = vpop.eup %2427 }
 0x42d   : > { %v2043_v10 = vmul.f32 0.6931472, %v2428_v33 }
 0x42f   : > { %v2044_v58 = vsub.f32 %v2036_v35, %v2043_v10 }
 0x431   : > { %v2045_v41 = vmul.f32 1.442695, %v2044_v58 }
 0x433   : > { %2429 = vpow2.f32 %v2045_v41 }
 0x439   : > { %v2430_v34 = vpop.eup %2429 }
 0x43a   : > { %2056 = vst [vmem:[#allocation1] ss:$2 sm:$0xff] %v2430_v34 }
 0x441   : > { %v2057_v45 = vld.sshfl [vmem:[#allocation1] sm:$0xff pattern:$0x75316420]  ;;  %v2058_v7 = vld.sshfl [vmem:[#allocation1 + $0x8] sm:$0xff pattern:$0x75316420] }
 0x442   : > { %2074 = vst [vmem:[#allocation1] ss:$2 sm:$0xff] %v2044_v58  ;;  %v2059_v18 = vrot.slane %v2057_v45, 6  ;;  %v2060_v42 = vrot.slane %v2058_v7, 6 }
 0x444   : > { %v2063_v1 = vmul.f32 %v2059_v18, %v2053_v17  ;;  %v2064_v3 = vmul.f32 %v2060_v42, %v2054_v26 }
 0x446   : > { %v2066_v43 = vsel %vm518_vm3, %v3405_v32, %v2064_v3  ;;  %v2065_v31 = vsel %vm518_vm3, %v3404_v47, %v2063_v1 }
 0x447   : > { %v2069_v24 = vrot.slane %v2066_v43, 4 }
 0x449   : > { %v2075_v54 = vld.sshfl [vmem:[#allocation1] sm:$0xff pattern:$0x75316420]  ;;  %v2076_v25 = vld.sshfl [vmem:[#allocation1 + $0x8] sm:$0xff pattern:$0x75316420]  ;;  %v2070_v22 = vsel %vm410_vm0, %v2065_v31, %v2069_v24 }
 0x44a   : > { %v2079_v2 = vsel %vm518_vm3, %v2075_v54, 0.0  ;;  %v2080_v29 = vsel %vm518_vm3, %v2076_v25, 0.0  ;;  %2072 = vst [vmem:[%s380_s16] sm:$0xff] %v2070_v22 }
 0x44b   : > { %v2081_v36 = vadd.f32 %v2080_v29, %v2079_v2 }
 0x44d   : > { %2082 = vadd.xlane.f32.xlu2 %v2081_v36 }
 0x44e   : > { %2458 = shalt.err (!%p2455_p3)
}
 0x44f   : > { %2374 = dma.vmem_to_hbm [thread:$0]  (%p2602_p5), %s2112_s14, 128, %s2114_s15, %s2095_s0   ;;  %vm2092_vm13 = vcmask 0  }
 0x450   : > { %s393_s1 = scalar_lea.vmem %s3318_s11, %s2617_s12 }
 0x4c0   : > { %v2083_v51 = vpop.xlane.xlu2 %2082 }
 0x4c1   : > { %v2084_v52 = vrot.slane %v2083_v51, 4 }
 0x4c3   : > { %v2085_v37 = vadd.f32 %v2084_v52, %v2083_v51 }
 0x4c5   : > { %v2086_v61 = vrot.slane %v2085_v37, 2 }
 0x4c7   : > { %v2087_v62 = vadd.f32 %v2086_v61, %v2085_v37 }
 0x4c9   : > { %v2088_v4 = vrot.slane %v2087_v62, 1 }
 0x4cb   : > { %v2089_v55 = vadd.f32 %v2088_v4, %v2087_v62 }
 0x4cd   : > { %2372 = vpush %v2089_v55 }
 0x4fe   : > { %s2373_s2 = spop %2372 }
 0x4ff   : > { %v2091_v56 = vstv %s2373_s2 }
 0x500   : > { %2093 = vst.msk [vmem:[%s393_s1] sm:$0x1] %vm2092_vm13, %v2091_v56 }
 0x501 PF: > { %p2380_p4 = scmp.ge.s32.totalorder %s2493_s20, 2  ;;  %s2128_s0 = sand.u32 1, %s2481_s17  }
 0x502   : > { %s2129_s4 = scalar_lea.sflag [#allocation3], %s2128_s0 }
 0x503   : > { %p2377_p5 = pnand %p2380_p4, %p2606_p6 }
 0x505   : > { %p2378_p7 = pneg %p2377_p5 }
 0x507   : > { %2476 = dma.done.wait (%p2378_p7), %s2129_s4, 128  }
 0x508   : > { %2478 = vsyncadd (%p2378_p7), %s2129_s4, 4294967168  ;;  %p22_p8 = scmp.ge.s32.totalorder %s2589_s23, 4   ;;  %s3406_s17 = smov %s2485_s18 }
 0x509   : > { %s3407_s18 = smov %s2489_s19  ;;  %s3408_s19 = smov %s2600_s26 }
 0x50a   : > { %s3409_s20 = smov %s2589_s23  ;;  %24 = sbr.rel (!%p22_p8) target bundleno = 10 (0xa), region = 126 }
 0x50f   :  { %2141 = vsyncpa [#allocation3], 1 }
 0x510   :  { %2143 = vsyncpa [#allocation3 + $0x1], 1 }

</bundles_post_ra>
